<compile_context>
chip_gen: v5e
topology: v5e:2x2
jax: 0.10.0
libtpu: 0.0.40
codegen_flags: <defaults>
</compile_context>

<pallas_src>
import numpy as np
import jax
import jax.numpy as jnp
from jax.experimental import pallas as pl

# ---------------- config (mirrors GPTEncoder.__init__) ----------------------
MASK_RATIO = 0.5
KEEP_FIRST_TOKENS_RATIO = 0.25
PADDING_VALUE = -1.0
START_TOKEN_VALUE = 1.0

B, G, E = 2, 8, 32           # batch, max_num_groups, embed_dim
H = 4                        # num attention heads
L = 2                        # number of transformer blocks
C = 3                        # center-point coordinate dim
POS_HIDDEN = 128             # hidden width of pos-embedding MLP
MLP_HIDDEN = 4 * E           # transformer MLP hidden width
HEAD_DIM = E // H
N = B * G                    # flattened token count processed by the kernel
NUM_VEC_ROWS = L * 9 + 2     # packed LN / bias vector slab rows


def _gelu(x):
    # TODO(synk): PyTorch nn.GELU defaults to the exact erf form; tanh approximation used here.
    return 0.5 * x * (1.0 + jnp.tanh(0.7978845608028654 * (x + 0.044715 * x * x * x)))


def _layernorm(x, g, b, eps=1e-5):
    mu = jnp.mean(x, axis=-1, keepdims=True)
    var = jnp.mean((x - mu) ** 2, axis=-1, keepdims=True)
    return (x - mu) * jax.lax.rsqrt(var + eps) * g + b


# ---------------------------- Pallas kernel ---------------------------------
def gpt_encoder_kernel(xp_ref, bias_ref, wattn_ref, w1_ref, b1_ref, w2_ref, vec_ref, out_ref):
    """One invocation processes the whole flattened batch (N = B*G tokens).

    xp_ref    : (2, N, E)        [0]=tokens (start token prepended), [1]=pos embedding
    bias_ref  : (N, N)           block-diagonal additive attention bias (cross-batch = -1e9)
    wattn_ref : (L*4, E, E)      per layer: [wq, wk, wv, wo]
    w1_ref    : (L, E, 4E)       MLP up-projection
    b1_ref    : (L, 1, 4E)       MLP up-projection bias (lane-dense)
    w2_ref    : (L, 4E, E)       MLP down-projection
    vec_ref   : (L*9+2, E)       per layer: ln1g,ln1b,bq,bk,bv,bo,ln2g,ln2b,b2 ; then ng,nb
    out_ref   : (N, E)
    """
    scale = 1.0 / (HEAD_DIM ** 0.5)
    x = xp_ref[0]          # (N, E)
    pos = xp_ref[1]        # (N, E)
    bias = bias_ref[...]   # (N, N)

    # L=2 -> keep the Python loop unrolled.  If L grows, switch to
    # lax.fori_loop(..., unroll=True) so vreg live ranges stay bounded.
    for l in range(L):
        base = l * 9
        ln1g = vec_ref[base + 0:base + 1, :]
        ln1b = vec_ref[base + 1:base + 2, :]
        bq = vec_ref[base + 2:base + 3, :]
        bk = vec_ref[base + 3:base + 4, :]
        bv = vec_ref[base + 4:base + 5, :]
        bo = vec_ref[base + 5:base + 6, :]
        ln2g = vec_ref[base + 6:base + 7, :]
        ln2b = vec_ref[base + 7:base + 8, :]
        b2 = vec_ref[base + 8:base + 9, :]

        u = x + pos
        hln = _layernorm(u, ln1g, ln1b)

        # Separate lane-0-aligned Q/K/V projections (no slicing of a fused 3E result).
        q = jnp.dot(hln, wattn_ref[4 * l + 0], preferred_element_type=jnp.float32) + bq
        k = jnp.dot(hln, wattn_ref[4 * l + 1], preferred_element_type=jnp.float32) + bk
        v = jnp.dot(hln, wattn_ref[4 * l + 2], preferred_element_type=jnp.float32) + bv

        # Head-batched attention over the whole flattened batch; cross-batch
        # interactions are masked out by the block-diagonal -1e9 bias.
        q3 = q.reshape(N, H, HEAD_DIM)
        k3 = k.reshape(N, H, HEAD_DIM)
        v3 = v.reshape(N, H, HEAD_DIM)
        s = jnp.einsum("qhd,khd->hqk", q3, k3, preferred_element_type=jnp.float32) * scale
        s = s + bias[None, :, :]
        s = s - jnp.max(s, axis=-1, keepdims=True)
        ex = jnp.exp(s)
        pa = ex * pl.reciprocal(jnp.sum(ex, axis=-1, keepdims=True), approx=True)
        o = jnp.einsum("hqk,khd->qhd", pa, v3,
                       preferred_element_type=jnp.float32).reshape(N, E)
        attn_out = jnp.dot(o, wattn_ref[4 * l + 3], preferred_element_type=jnp.float32) + bo

        x1 = u + attn_out
        h2 = _layernorm(x1, ln2g, ln2b)
        m = jnp.dot(h2, w1_ref[l], preferred_element_type=jnp.float32) + b1_ref[l]
        m = _gelu(m)
        m = jnp.dot(m, w2_ref[l], preferred_element_type=jnp.float32) + b2
        x = x1 + m

    ng = vec_ref[L * 9 + 0:L * 9 + 1, :]
    nb = vec_ref[L * 9 + 1:L * 9 + 2, :]
    out_ref[...] = _layernorm(x, ng, nb)


# ------------------------------ glue / wrapper -------------------------------
def _mask_center_rand(center_np, padding_mask_np, mask_ratio, keep_first_ratio, rng):
    """numpy port of GPTEncoder._mask_center_rand (host-side glue, deterministic rng)."""
    bb, gg, _ = center_np.shape
    if mask_ratio == 0:
        return np.zeros((bb, gg), dtype=bool)
    num_padding = np.count_nonzero(padding_mask_np, axis=-1)
    num_non_pad = gg - num_padding
    num_kept = (num_non_pad * keep_first_ratio).astype(np.int64)
    num_masks = ((num_non_pad - num_kept) * mask_ratio).astype(np.int64)
    max_num_masks = int(num_masks.max())
    overall = np.zeros((bb, gg), dtype=np.float32)
    for i in range(bb):
        nnp_, nm, nk = int(num_non_pad[i]), int(num_masks[i]), int(num_kept[i])
        mask = np.concatenate([np.ones(nm, bool), np.zeros(nnp_ - nm - nk, bool)])
        mask = mask[rng.permutation(mask.shape[0])]
        mask = np.concatenate([np.zeros(nk, bool), mask, np.ones(max_num_masks - nm, bool)])
        mask = np.concatenate([mask.astype(np.float32),
                               np.zeros(gg - mask.shape[0], np.float32)])
        overall[i] = mask
    return overall.astype(bool)


def _pos_embed(center, p):
    """pos-embedding MLP hoisted out of the kernel (XLA side); row 0 = start-token pos."""
    pe = _gelu(jnp.dot(center[:, :-1, :], p["pw1"]) + p["pb1"])
    pe = jnp.dot(pe, p["pw2"]) + p["pb2"]
    start = jnp.full((center.shape[0], 1, E), START_TOKEN_VALUE, jnp.float32)
    return jnp.concatenate([start, pe], axis=1)                                   # (B, G, E)


def gpt_encoder_forward(x, center_points_np, params, mask_rng):
    """Returns (encoded, padding_mask, attn_mask) exactly like GPTEncoder.forward."""
    # --- host-side mask construction (glue) -----------------------------------
    padding_mask = np.all(center_points_np == PADDING_VALUE, axis=-1)             # (B, G)
    vanilla = np.triu(np.ones((G, G), bool), k=1)
    random_mask = _mask_center_rand(center_points_np, padding_mask,
                                    MASK_RATIO, KEEP_FIRST_TOKENS_RATIO, mask_rng)
    eye = np.eye(G, dtype=bool)
    attn_mask = vanilla[None] | (random_mask[:, None, :] & ~eye[None])            # (B, G, G)
    attn_mask_rep = np.repeat(attn_mask, H, axis=0)                               # (B*H, G, G)
    bias_b = np.where(attn_mask | padding_mask[:, None, :], -1e9, 0.0).astype(np.float32)

    # Block-diagonal bias over the flattened batch: cross-batch attention = -1e9.
    # (Identical to per-batch attention except on fully-masked padded query rows,
    #  which are degenerate/uniform either way.)
    bias_full = np.full((N, N), -1e9, np.float32)
    for b in range(B):
        bias_full[b * G:(b + 1) * G, b * G:(b + 1) * G] = bias_b[b]

    # --- token shift + hoisted positional embedding (XLA side) ----------------
    center = jnp.asarray(center_points_np, jnp.float32)
    xs = jnp.concatenate(
        [jnp.full((B, 1, E), START_TOKEN_VALUE, jnp.float32), x[:, :-1, :]], axis=1)
    pos = _pos_embed(center, params)

    xp = jnp.stack([xs.reshape(N, E), pos.reshape(N, E)], axis=0)                 # (2, N, E)
    bias_j = jnp.asarray(bias_full)                                               # (N, N)

    # --- pack weights into few refs --------------------------------------------
    w_attn = jnp.stack([params["wq"], params["wk"], params["wv"], params["wo"]],
                       axis=1).reshape(L * 4, E, E)
    vec_rows = []
    for l in range(L):
        vec_rows += [params[k][l] for k in
                     ("ln1g", "ln1b", "bq", "bk", "bv", "bo", "ln2g", "ln2b", "b2")]
    vec_rows += [params["ng"], params["nb"]]
    vecs = jnp.stack(vec_rows, axis=0)                                            # (L*9+2, E)
    b1 = params["b1"][:, None, :]                                                 # (L, 1, 4E)

    # Single grid-less invocation: all operands (a few tens of KB) live in VMEM.
    out_flat = pl.pallas_call(
        gpt_encoder_kernel,
        out_shape=jax.ShapeDtypeStruct((N, E), jnp.float32),
    )(xp, bias_j, w_attn, params["w1"], b1, params["w2"], vecs)

    return out_flat.reshape(B, G, E), jnp.asarray(padding_mask), jnp.asarray(attn_mask_rep)


# ------------------------------ pure-JAX reference ---------------------------
def reference_forward(x_tok, pos, bias, p):
    scale = 1.0 / (HEAD_DIM ** 0.5)
    xx = x_tok
    for l in range(L):
        u = xx + pos
        hln = _layernorm(u, p["ln1g"][l], p["ln1b"][l])
        q = jnp.dot(hln, p["wq"][l]) + p["bq"][l]
        k = jnp.dot(hln, p["wk"][l]) + p["bk"][l]
        v = jnp.dot(hln, p["wv"][l]) + p["bv"][l]
        q = q.reshape(B, G, H, HEAD_DIM)
        k = k.reshape(B, G, H, HEAD_DIM)
        v = v.reshape(B, G, H, HEAD_DIM)
        s = jnp.einsum("bqhd,bkhd->bhqk", q, k) * scale + bias[:, None]
        a = jax.nn.softmax(s, axis=-1)
        o = jnp.einsum("bhqk,bkhd->bqhd", a, v).reshape(B, G, E)
        attn = jnp.dot(o, p["wo"][l]) + p["bo"][l]
        x1 = u + attn
        h2 = _layernorm(x1, p["ln2g"][l], p["ln2b"][l])
        m = _gelu(jnp.dot(h2, p["w1"][l]) + p["b1"][l])
        m = jnp.dot(m, p["w2"][l]) + p["b2"][l]
        xx = x1 + m
    return _layernorm(xx, p["ng"], p["nb"])


# ----------------------------------- main ------------------------------------
if __name__ == "__main__":
    key = jax.random.PRNGKey(0)
    ks = jax.random.split(key, 10)

    def tn(k, shape, std=0.02):   # trunc_normal_(std=0.02) as in _init_weights
        return (std * jax.random.truncated_normal(k, -2.0, 2.0, shape)).astype(jnp.float32)

    params = dict(
        pw1=tn(ks[0], (C, POS_HIDDEN)), pb1=jnp.zeros((POS_HIDDEN,), jnp.float32),
        pw2=tn(ks[1], (POS_HIDDEN, E)), pb2=jnp.zeros((E,), jnp.float32),
        wq=tn(ks[2], (L, E, E)), wk=tn(ks[3], (L, E, E)),
        wv=tn(ks[4], (L, E, E)), wo=tn(ks[5], (L, E, E)),
        bq=jnp.zeros((L, E), jnp.float32), bk=jnp.zeros((L, E), jnp.float32),
        bv=jnp.zeros((L, E), jnp.float32), bo=jnp.zeros((L, E), jnp.float32),
        ln1g=jnp.ones((L, E), jnp.float32), ln1b=jnp.zeros((L, E), jnp.float32),
        ln2g=jnp.ones((L, E), jnp.float32), ln2b=jnp.zeros((L, E), jnp.float32),
        w1=tn(ks[6], (L, E, MLP_HIDDEN)), b1=jnp.zeros((L, MLP_HIDDEN), jnp.float32),
        w2=tn(ks[7], (L, MLP_HIDDEN, E)), b2=jnp.zeros((L, E), jnp.float32),
        ng=jnp.ones((E,), jnp.float32), nb=jnp.zeros((E,), jnp.float32),
    )

    x = jax.random.normal(ks[8], (B, G, E), jnp.float32)
    # np.array(...) makes a writable host copy (fixes the read-only assignment crash).
    center_np = np.array(jax.random.normal(ks[9], (B, G, C), jnp.float32))
    center_np[1, -2:, :] = PADDING_VALUE   # two padded groups in batch element 1

    mask_rng = np.random.default_rng(0)
    out, padding_mask, attn_mask = gpt_encoder_forward(x, center_np, params, mask_rng)
    out = jax.block_until_ready(out)

    # correctness check vs. pure-JAX reference using identical masks / pos
    pad = np.all(center_np == PADDING_VALUE, axis=-1)
    attn_b = np.asarray(attn_mask).reshape(B, H, G, G)[:, 0]
    bias_ref = jnp.asarray(np.where(attn_b | pad[:, None, :], -1e9, 0.0).astype(np.float32))
    xs_ref = jnp.concatenate([jnp.full((B, 1, E), START_TOKEN_VALUE, jnp.float32),
                              x[:, :-1, :]], axis=1)
    pos_ref = _pos_embed(jnp.asarray(center_np, jnp.float32), params)
    ref = jax.block_until_ready(reference_forward(xs_ref, pos_ref, bias_ref, params))

    err = float(jnp.max(jnp.abs(out - ref)))
    assert out.shape == (B, G, E) and padding_mask.shape == (B, G)
    assert attn_mask.shape == (B * H, G, G)
    assert err < 2e-2, f"mismatch vs reference: {err}"
    print("KERNEL_OK")
</pallas_src>

<mosaic_0001>
module attributes {stable_mosaic.version = 11 : i64} {
  func.func @gpt_encoder_kernel(%arg0: memref<2x16x32xf32, #tpu.memory_space<vmem>>, %arg1: memref<16x16xf32, #tpu.memory_space<vmem>>, %arg2: memref<8x32x32xf32, #tpu.memory_space<vmem>>, %arg3: memref<2x32x128xf32, #tpu.memory_space<vmem>>, %arg4: memref<2x1x128xf32, #tpu.memory_space<vmem>>, %arg5: memref<2x128x32xf32, #tpu.memory_space<vmem>>, %arg6: memref<20x32xf32, #tpu.memory_space<vmem>>, %arg7: memref<16x32xf32, #tpu.memory_space<vmem>>) attributes {dimension_semantics = [], scalar_prefetch = 0 : i64, scratch_operands = 0 : i64, tpu.core_type = #tpu.core_type<tc>} {
    %c0 = arith.constant 0 : index
    %c0_0 = arith.constant 0 : index
    %c0_1 = arith.constant 0 : index
    %0 = vector.load %arg0[%c0, %c0_0, %c0_1] : memref<2x16x32xf32, #tpu.memory_space<vmem>>, vector<1x16x32xf32>
    %1 = vector.shape_cast %0 : vector<1x16x32xf32> to vector<16x32xf32>
    %c1 = arith.constant 1 : index
    %c0_2 = arith.constant 0 : index
    %c0_3 = arith.constant 0 : index
    %2 = vector.load %arg0[%c1, %c0_2, %c0_3] : memref<2x16x32xf32, #tpu.memory_space<vmem>>, vector<1x16x32xf32>
    %3 = vector.shape_cast %2 : vector<1x16x32xf32> to vector<16x32xf32>
    %c0_4 = arith.constant 0 : index
    %c0_5 = arith.constant 0 : index
    %4 = vector.load %arg1[%c0_4, %c0_5] : memref<16x16xf32, #tpu.memory_space<vmem>>, vector<16x16xf32>
    %c0_6 = arith.constant 0 : index
    %c0_7 = arith.constant 0 : index
    %5 = vector.load %arg6[%c0_6, %c0_7] : memref<20x32xf32, #tpu.memory_space<vmem>>, vector<1x32xf32>
    %c1_8 = arith.constant 1 : index
    %c0_9 = arith.constant 0 : index
    %6 = vector.load %arg6[%c1_8, %c0_9] : memref<20x32xf32, #tpu.memory_space<vmem>>, vector<1x32xf32>
    %c2 = arith.constant 2 : index
    %c0_10 = arith.constant 0 : index
    %7 = vector.load %arg6[%c2, %c0_10] : memref<20x32xf32, #tpu.memory_space<vmem>>, vector<1x32xf32>
    %c3 = arith.constant 3 : index
    %c0_11 = arith.constant 0 : index
    %8 = vector.load %arg6[%c3, %c0_11] : memref<20x32xf32, #tpu.memory_space<vmem>>, vector<1x32xf32>
    %c4 = arith.constant 4 : index
    %c0_12 = arith.constant 0 : index
    %9 = vector.load %arg6[%c4, %c0_12] : memref<20x32xf32, #tpu.memory_space<vmem>>, vector<1x32xf32>
    %c5 = arith.constant 5 : index
    %c0_13 = arith.constant 0 : index
    %10 = vector.load %arg6[%c5, %c0_13] : memref<20x32xf32, #tpu.memory_space<vmem>>, vector<1x32xf32>
    %c6 = arith.constant 6 : index
    %c0_14 = arith.constant 0 : index
    %11 = vector.load %arg6[%c6, %c0_14] : memref<20x32xf32, #tpu.memory_space<vmem>>, vector<1x32xf32>
    %c7 = arith.constant 7 : index
    %c0_15 = arith.constant 0 : index
    %12 = vector.load %arg6[%c7, %c0_15] : memref<20x32xf32, #tpu.memory_space<vmem>>, vector<1x32xf32>
    %c8 = arith.constant 8 : index
    %c0_16 = arith.constant 0 : index
    %13 = vector.load %arg6[%c8, %c0_16] : memref<20x32xf32, #tpu.memory_space<vmem>>, vector<1x32xf32>
    %14 = arith.addf %1, %3 : vector<16x32xf32>
    %cst = arith.constant dense<0.000000e+00> : vector<16xf32>
    %15 = vector.multi_reduction <add>, %14, %cst [1] : vector<16x32xf32> to vector<16xf32>
    %16 = vector.shape_cast %15 : vector<16xf32> to vector<16x1xf32>
    %cst_17 = arith.constant 3.200000e+01 : f32
    %17 = vector.broadcast %cst_17 : f32 to vector<16x1xf32>
    %18 = arith.divf %16, %17 : vector<16x1xf32>
    %19 = vector.broadcast %18 : vector<16x1xf32> to vector<16x32xf32>
    %20 = arith.subf %14, %19 : vector<16x32xf32>
    %21 = arith.mulf %20, %20 : vector<16x32xf32>
    %cst_18 = arith.constant dense<0.000000e+00> : vector<16xf32>
    %22 = vector.multi_reduction <add>, %21, %cst_18 [1] : vector<16x32xf32> to vector<16xf32>
    %23 = vector.shape_cast %22 : vector<16xf32> to vector<16x1xf32>
    %cst_19 = arith.constant 3.200000e+01 : f32
    %24 = vector.broadcast %cst_19 : f32 to vector<16x1xf32>
    %25 = arith.divf %23, %24 : vector<16x1xf32>
    %26 = vector.broadcast %18 : vector<16x1xf32> to vector<16x32xf32>
    %27 = arith.subf %14, %26 : vector<16x32xf32>
    %cst_20 = arith.constant 9.99999974E-6 : f32
    %28 = vector.broadcast %cst_20 : f32 to vector<16x1xf32>
    %29 = arith.addf %25, %28 : vector<16x1xf32>
    %30 = math.rsqrt %29 : vector<16x1xf32>
    %31 = vector.broadcast %30 : vector<16x1xf32> to vector<16x32xf32>
    %32 = arith.mulf %27, %31 : vector<16x32xf32>
    %33 = vector.broadcast %5 : vector<1x32xf32> to vector<16x32xf32>
    %34 = arith.mulf %32, %33 : vector<16x32xf32>
    %35 = vector.broadcast %6 : vector<1x32xf32> to vector<16x32xf32>
    %36 = arith.addf %34, %35 : vector<16x32xf32>
    %c0_21 = arith.constant 0 : index
    %c0_22 = arith.constant 0 : index
    %c0_23 = arith.constant 0 : index
    %37 = vector.load %arg2[%c0_21, %c0_22, %c0_23] : memref<8x32x32xf32, #tpu.memory_space<vmem>>, vector<1x32x32xf32>
    %38 = vector.shape_cast %37 : vector<1x32x32xf32> to vector<32x32xf32>
    %cst_24 = arith.constant dense<0.000000e+00> : vector<16x32xf32>
    %39 = tpu.matmul %36, %38, %cst_24 {dimension_numbers = #tpu.dot_dimension_numbers<[1], [0], [0], [1], [0, 0, 1, 1], [], []>} : vector<16x32xf32>, vector<32x32xf32>, vector<16x32xf32> -> vector<16x32xf32>
    %40 = vector.broadcast %7 : vector<1x32xf32> to vector<16x32xf32>
    %41 = arith.addf %39, %40 : vector<16x32xf32>
    %c1_25 = arith.constant 1 : index
    %c0_26 = arith.constant 0 : index
    %c0_27 = arith.constant 0 : index
    %42 = vector.load %arg2[%c1_25, %c0_26, %c0_27] : memref<8x32x32xf32, #tpu.memory_space<vmem>>, vector<1x32x32xf32>
    %43 = vector.shape_cast %42 : vector<1x32x32xf32> to vector<32x32xf32>
    %cst_28 = arith.constant dense<0.000000e+00> : vector<16x32xf32>
    %44 = tpu.matmul %36, %43, %cst_28 {dimension_numbers = #tpu.dot_dimension_numbers<[1], [0], [0], [1], [0, 0, 1, 1], [], []>} : vector<16x32xf32>, vector<32x32xf32>, vector<16x32xf32> -> vector<16x32xf32>
    %45 = vector.broadcast %8 : vector<1x32xf32> to vector<16x32xf32>
    %46 = arith.addf %44, %45 : vector<16x32xf32>
    %c2_29 = arith.constant 2 : index
    %c0_30 = arith.constant 0 : index
    %c0_31 = arith.constant 0 : index
    %47 = vector.load %arg2[%c2_29, %c0_30, %c0_31] : memref<8x32x32xf32, #tpu.memory_space<vmem>>, vector<1x32x32xf32>
    %48 = vector.shape_cast %47 : vector<1x32x32xf32> to vector<32x32xf32>
    %cst_32 = arith.constant dense<0.000000e+00> : vector<16x32xf32>
    %49 = tpu.matmul %36, %48, %cst_32 {dimension_numbers = #tpu.dot_dimension_numbers<[1], [0], [0], [1], [0, 0, 1, 1], [], []>} : vector<16x32xf32>, vector<32x32xf32>, vector<16x32xf32> -> vector<16x32xf32>
    %50 = vector.broadcast %9 : vector<1x32xf32> to vector<16x32xf32>
    %51 = arith.addf %49, %50 : vector<16x32xf32>
    %52 = vector.shape_cast %41 : vector<16x32xf32> to vector<16x4x8xf32>
    %53 = vector.shape_cast %46 : vector<16x32xf32> to vector<16x4x8xf32>
    %54 = vector.shape_cast %51 : vector<16x32xf32> to vector<16x4x8xf32>
    "tpu.trace_start"() <{level = 10 : i32, message = "qhd,khd->hqk"}> : () -> ()
    %cst_33 = arith.constant dense<0.000000e+00> : vector<4x16x16xf32>
    %55 = tpu.matmul %52, %53, %cst_33 {dimension_numbers = #tpu.dot_dimension_numbers<[2], [2], [0], [0], [0, 1, 0, 0, 1, 0], [1], [1]>} : vector<16x4x8xf32>, vector<16x4x8xf32>, vector<4x16x16xf32> -> vector<4x16x16xf32>
    "tpu.trace_stop"() : () -> ()
    %cst_34 = arith.constant 0.353553385 : f32
    %56 = vector.broadcast %cst_34 : f32 to vector<4x16x16xf32>
    %57 = arith.mulf %55, %56 : vector<4x16x16xf32>
    %58 = vector.shape_cast %4 : vector<16x16xf32> to vector<1x16x16xf32>
    %59 = vector.broadcast %58 : vector<1x16x16xf32> to vector<4x16x16xf32>
    %60 = arith.addf %57, %59 : vector<4x16x16xf32>
    %cst_35 = arith.constant dense<0xFF800000> : vector<4x16xf32>
    %61 = vector.multi_reduction <maximumf>, %60, %cst_35 [2] : vector<4x16x16xf32> to vector<4x16xf32>
    %62 = vector.shape_cast %61 : vector<4x16xf32> to vector<4x16x1xf32>
    %63 = vector.broadcast %62 : vector<4x16x1xf32> to vector<4x16x16xf32>
    %64 = arith.subf %60, %63 : vector<4x16x16xf32>
    %65 = math.exp %64 : vector<4x16x16xf32>
    %cst_36 = arith.constant dense<0.000000e+00> : vector<4x16xf32>
    %66 = vector.multi_reduction <add>, %65, %cst_36 [2] : vector<4x16x16xf32> to vector<4x16xf32>
    %67 = vector.shape_cast %66 : vector<4x16xf32> to vector<4x16x1xf32>
    %68 = tpu.reciprocal %67 {approx = true} : vector<4x16x1xf32> -> vector<4x16x1xf32>
    %69 = vector.broadcast %68 : vector<4x16x1xf32> to vector<4x16x16xf32>
    %70 = arith.mulf %65, %69 : vector<4x16x16xf32>
    "tpu.trace_start"() <{level = 10 : i32, message = "hqk,khd->qhd"}> : () -> ()
    %cst_37 = arith.constant dense<0.000000e+00> : vector<4x8x16xf32>
    %71 = tpu.matmul %54, %70, %cst_37 {dimension_numbers = #tpu.dot_dimension_numbers<[0], [2], [2], [1], [0, 1, 0, 2, 1, 1], [1], [0]>} : vector<16x4x8xf32>, vector<4x16x16xf32>, vector<4x8x16xf32> -> vector<4x8x16xf32>
    %72 = tpu.transpose %71, [2, 0, 1] : vector<4x8x16xf32> -> vector<16x4x8xf32>
    "tpu.trace_stop"() : () -> ()
    %73 = vector.shape_cast %72 : vector<16x4x8xf32> to vector<16x32xf32>
    %c3_38 = arith.constant 3 : index
    %c0_39 = arith.constant 0 : index
    %c0_40 = arith.constant 0 : index
    %74 = vector.load %arg2[%c3_38, %c0_39, %c0_40] : memref<8x32x32xf32, #tpu.memory_space<vmem>>, vector<1x32x32xf32>
    %75 = vector.shape_cast %74 : vector<1x32x32xf32> to vector<32x32xf32>
    %cst_41 = arith.constant dense<0.000000e+00> : vector<16x32xf32>
    %76 = tpu.matmul %73, %75, %cst_41 {dimension_numbers = #tpu.dot_dimension_numbers<[1], [0], [0], [1], [0, 0, 1, 1], [], []>} : vector<16x32xf32>, vector<32x32xf32>, vector<16x32xf32> -> vector<16x32xf32>
    %77 = vector.broadcast %10 : vector<1x32xf32> to vector<16x32xf32>
    %78 = arith.addf %76, %77 : vector<16x32xf32>
    %79 = arith.addf %14, %78 : vector<16x32xf32>
    %cst_42 = arith.constant dense<0.000000e+00> : vector<16xf32>
    %80 = vector.multi_reduction <add>, %79, %cst_42 [1] : vector<16x32xf32> to vector<16xf32>
    %81 = vector.shape_cast %80 : vector<16xf32> to vector<16x1xf32>
    %cst_43 = arith.constant 3.200000e+01 : f32
    %82 = vector.broadcast %cst_43 : f32 to vector<16x1xf32>
    %83 = arith.divf %81, %82 : vector<16x1xf32>
    %84 = vector.broadcast %83 : vector<16x1xf32> to vector<16x32xf32>
    %85 = arith.subf %79, %84 : vector<16x32xf32>
    %86 = arith.mulf %85, %85 : vector<16x32xf32>
    %cst_44 = arith.constant dense<0.000000e+00> : vector<16xf32>
    %87 = vector.multi_reduction <add>, %86, %cst_44 [1] : vector<16x32xf32> to vector<16xf32>
    %88 = vector.shape_cast %87 : vector<16xf32> to vector<16x1xf32>
    %cst_45 = arith.constant 3.200000e+01 : f32
    %89 = vector.broadcast %cst_45 : f32 to vector<16x1xf32>
    %90 = arith.divf %88, %89 : vector<16x1xf32>
    %91 = vector.broadcast %83 : vector<16x1xf32> to vector<16x32xf32>
    %92 = arith.subf %79, %91 : vector<16x32xf32>
    %cst_46 = arith.constant 9.99999974E-6 : f32
    %93 = vector.broadcast %cst_46 : f32 to vector<16x1xf32>
    %94 = arith.addf %90, %93 : vector<16x1xf32>
    %95 = math.rsqrt %94 : vector<16x1xf32>
    %96 = vector.broadcast %95 : vector<16x1xf32> to vector<16x32xf32>
    %97 = arith.mulf %92, %96 : vector<16x32xf32>
    %98 = vector.broadcast %11 : vector<1x32xf32> to vector<16x32xf32>
    %99 = arith.mulf %97, %98 : vector<16x32xf32>
    %100 = vector.broadcast %12 : vector<1x32xf32> to vector<16x32xf32>
    %101 = arith.addf %99, %100 : vector<16x32xf32>
    %c0_47 = arith.constant 0 : index
    %c0_48 = arith.constant 0 : index
    %c0_49 = arith.constant 0 : index
    %102 = vector.load %arg3[%c0_47, %c0_48, %c0_49] : memref<2x32x128xf32, #tpu.memory_space<vmem>>, vector<1x32x128xf32>
    %103 = vector.shape_cast %102 : vector<1x32x128xf32> to vector<32x128xf32>
    %cst_50 = arith.constant dense<0.000000e+00> : vector<16x128xf32>
    %104 = tpu.matmul %101, %103, %cst_50 {dimension_numbers = #tpu.dot_dimension_numbers<[1], [0], [0], [1], [0, 0, 1, 1], [], []>} : vector<16x32xf32>, vector<32x128xf32>, vector<16x128xf32> -> vector<16x128xf32>
    %c0_51 = arith.constant 0 : index
    %c0_52 = arith.constant 0 : index
    %c0_53 = arith.constant 0 : index
    %105 = vector.load %arg4[%c0_51, %c0_52, %c0_53] : memref<2x1x128xf32, #tpu.memory_space<vmem>>, vector<1x1x128xf32>
    %106 = vector.shape_cast %105 : vector<1x1x128xf32> to vector<1x128xf32>
    %107 = vector.broadcast %106 : vector<1x128xf32> to vector<16x128xf32>
    %108 = arith.addf %104, %107 : vector<16x128xf32>
    %cst_54 = arith.constant 5.000000e-01 : f32
    %109 = vector.broadcast %cst_54 : f32 to vector<16x128xf32>
    %110 = arith.mulf %109, %108 : vector<16x128xf32>
    %cst_55 = arith.constant 4.471500e-02 : f32
    %111 = vector.broadcast %cst_55 : f32 to vector<16x128xf32>
    %112 = arith.mulf %111, %108 : vector<16x128xf32>
    %113 = arith.mulf %112, %108 : vector<16x128xf32>
    %114 = arith.mulf %113, %108 : vector<16x128xf32>
    %115 = arith.addf %108, %114 : vector<16x128xf32>
    %cst_56 = arith.constant 0.797884583 : f32
    %116 = vector.broadcast %cst_56 : f32 to vector<16x128xf32>
    %117 = arith.mulf %116, %115 : vector<16x128xf32>
    %118 = math.tanh %117 : vector<16x128xf32>
    %cst_57 = arith.constant 1.000000e+00 : f32
    %119 = vector.broadcast %cst_57 : f32 to vector<16x128xf32>
    %120 = arith.addf %119, %118 : vector<16x128xf32>
    %121 = arith.mulf %110, %120 : vector<16x128xf32>
    %c0_58 = arith.constant 0 : index
    %c0_59 = arith.constant 0 : index
    %c0_60 = arith.constant 0 : index
    %122 = vector.load %arg5[%c0_58, %c0_59, %c0_60] : memref<2x128x32xf32, #tpu.memory_space<vmem>>, vector<1x128x32xf32>
    %123 = vector.shape_cast %122 : vector<1x128x32xf32> to vector<128x32xf32>
    %cst_61 = arith.constant dense<0.000000e+00> : vector<16x32xf32>
    %124 = tpu.matmul %121, %123, %cst_61 {dimension_numbers = #tpu.dot_dimension_numbers<[1], [0], [0], [1], [0, 0, 1, 1], [], []>} : vector<16x128xf32>, vector<128x32xf32>, vector<16x32xf32> -> vector<16x32xf32>
    %125 = vector.broadcast %13 : vector<1x32xf32> to vector<16x32xf32>
    %126 = arith.addf %124, %125 : vector<16x32xf32>
    %127 = arith.addf %79, %126 : vector<16x32xf32>
    %c9 = arith.constant 9 : index
    %c0_62 = arith.constant 0 : index
    %128 = vector.load %arg6[%c9, %c0_62] : memref<20x32xf32, #tpu.memory_space<vmem>>, vector<1x32xf32>
    %c10 = arith.constant 10 : index
    %c0_63 = arith.constant 0 : index
    %129 = vector.load %arg6[%c10, %c0_63] : memref<20x32xf32, #tpu.memory_space<vmem>>, vector<1x32xf32>
    %c11 = arith.constant 11 : index
    %c0_64 = arith.constant 0 : index
    %130 = vector.load %arg6[%c11, %c0_64] : memref<20x32xf32, #tpu.memory_space<vmem>>, vector<1x32xf32>
    %c12 = arith.constant 12 : index
    %c0_65 = arith.constant 0 : index
    %131 = vector.load %arg6[%c12, %c0_65] : memref<20x32xf32, #tpu.memory_space<vmem>>, vector<1x32xf32>
    %c13 = arith.constant 13 : index
    %c0_66 = arith.constant 0 : index
    %132 = vector.load %arg6[%c13, %c0_66] : memref<20x32xf32, #tpu.memory_space<vmem>>, vector<1x32xf32>
    %c14 = arith.constant 14 : index
    %c0_67 = arith.constant 0 : index
    %133 = vector.load %arg6[%c14, %c0_67] : memref<20x32xf32, #tpu.memory_space<vmem>>, vector<1x32xf32>
    %c15 = arith.constant 15 : index
    %c0_68 = arith.constant 0 : index
    %134 = vector.load %arg6[%c15, %c0_68] : memref<20x32xf32, #tpu.memory_space<vmem>>, vector<1x32xf32>
    %c16 = arith.constant 16 : index
    %c0_69 = arith.constant 0 : index
    %135 = vector.load %arg6[%c16, %c0_69] : memref<20x32xf32, #tpu.memory_space<vmem>>, vector<1x32xf32>
    %c17 = arith.constant 17 : index
    %c0_70 = arith.constant 0 : index
    %136 = vector.load %arg6[%c17, %c0_70] : memref<20x32xf32, #tpu.memory_space<vmem>>, vector<1x32xf32>
    %137 = arith.addf %127, %3 : vector<16x32xf32>
    %cst_71 = arith.constant dense<0.000000e+00> : vector<16xf32>
    %138 = vector.multi_reduction <add>, %137, %cst_71 [1] : vector<16x32xf32> to vector<16xf32>
    %139 = vector.shape_cast %138 : vector<16xf32> to vector<16x1xf32>
    %cst_72 = arith.constant 3.200000e+01 : f32
    %140 = vector.broadcast %cst_72 : f32 to vector<16x1xf32>
    %141 = arith.divf %139, %140 : vector<16x1xf32>
    %142 = vector.broadcast %141 : vector<16x1xf32> to vector<16x32xf32>
    %143 = arith.subf %137, %142 : vector<16x32xf32>
    %144 = arith.mulf %143, %143 : vector<16x32xf32>
    %cst_73 = arith.constant dense<0.000000e+00> : vector<16xf32>
    %145 = vector.multi_reduction <add>, %144, %cst_73 [1] : vector<16x32xf32> to vector<16xf32>
    %146 = vector.shape_cast %145 : vector<16xf32> to vector<16x1xf32>
    %cst_74 = arith.constant 3.200000e+01 : f32
    %147 = vector.broadcast %cst_74 : f32 to vector<16x1xf32>
    %148 = arith.divf %146, %147 : vector<16x1xf32>
    %149 = vector.broadcast %141 : vector<16x1xf32> to vector<16x32xf32>
    %150 = arith.subf %137, %149 : vector<16x32xf32>
    %cst_75 = arith.constant 9.99999974E-6 : f32
    %151 = vector.broadcast %cst_75 : f32 to vector<16x1xf32>
    %152 = arith.addf %148, %151 : vector<16x1xf32>
    %153 = math.rsqrt %152 : vector<16x1xf32>
    %154 = vector.broadcast %153 : vector<16x1xf32> to vector<16x32xf32>
    %155 = arith.mulf %150, %154 : vector<16x32xf32>
    %156 = vector.broadcast %128 : vector<1x32xf32> to vector<16x32xf32>
    %157 = arith.mulf %155, %156 : vector<16x32xf32>
    %158 = vector.broadcast %129 : vector<1x32xf32> to vector<16x32xf32>
    %159 = arith.addf %157, %158 : vector<16x32xf32>
    %c4_76 = arith.constant 4 : index
    %c0_77 = arith.constant 0 : index
    %c0_78 = arith.constant 0 : index
    %160 = vector.load %arg2[%c4_76, %c0_77, %c0_78] : memref<8x32x32xf32, #tpu.memory_space<vmem>>, vector<1x32x32xf32>
    %161 = vector.shape_cast %160 : vector<1x32x32xf32> to vector<32x32xf32>
    %cst_79 = arith.constant dense<0.000000e+00> : vector<16x32xf32>
    %162 = tpu.matmul %159, %161, %cst_79 {dimension_numbers = #tpu.dot_dimension_numbers<[1], [0], [0], [1], [0, 0, 1, 1], [], []>} : vector<16x32xf32>, vector<32x32xf32>, vector<16x32xf32> -> vector<16x32xf32>
    %163 = vector.broadcast %130 : vector<1x32xf32> to vector<16x32xf32>
    %164 = arith.addf %162, %163 : vector<16x32xf32>
    %c5_80 = arith.constant 5 : index
    %c0_81 = arith.constant 0 : index
    %c0_82 = arith.constant 0 : index
    %165 = vector.load %arg2[%c5_80, %c0_81, %c0_82] : memref<8x32x32xf32, #tpu.memory_space<vmem>>, vector<1x32x32xf32>
    %166 = vector.shape_cast %165 : vector<1x32x32xf32> to vector<32x32xf32>
    %cst_83 = arith.constant dense<0.000000e+00> : vector<16x32xf32>
    %167 = tpu.matmul %159, %166, %cst_83 {dimension_numbers = #tpu.dot_dimension_numbers<[1], [0], [0], [1], [0, 0, 1, 1], [], []>} : vector<16x32xf32>, vector<32x32xf32>, vector<16x32xf32> -> vector<16x32xf32>
    %168 = vector.broadcast %131 : vector<1x32xf32> to vector<16x32xf32>
    %169 = arith.addf %167, %168 : vector<16x32xf32>
    %c6_84 = arith.constant 6 : index
    %c0_85 = arith.constant 0 : index
    %c0_86 = arith.constant 0 : index
    %170 = vector.load %arg2[%c6_84, %c0_85, %c0_86] : memref<8x32x32xf32, #tpu.memory_space<vmem>>, vector<1x32x32xf32>
    %171 = vector.shape_cast %170 : vector<1x32x32xf32> to vector<32x32xf32>
    %cst_87 = arith.constant dense<0.000000e+00> : vector<16x32xf32>
    %172 = tpu.matmul %159, %171, %cst_87 {dimension_numbers = #tpu.dot_dimension_numbers<[1], [0], [0], [1], [0, 0, 1, 1], [], []>} : vector<16x32xf32>, vector<32x32xf32>, vector<16x32xf32> -> vector<16x32xf32>
    %173 = vector.broadcast %132 : vector<1x32xf32> to vector<16x32xf32>
    %174 = arith.addf %172, %173 : vector<16x32xf32>
    %175 = vector.shape_cast %164 : vector<16x32xf32> to vector<16x4x8xf32>
    %176 = vector.shape_cast %169 : vector<16x32xf32> to vector<16x4x8xf32>
    %177 = vector.shape_cast %174 : vector<16x32xf32> to vector<16x4x8xf32>
    "tpu.trace_start"() <{level = 10 : i32, message = "qhd,khd->hqk"}> : () -> ()
    %cst_88 = arith.constant dense<0.000000e+00> : vector<4x16x16xf32>
    %178 = tpu.matmul %175, %176, %cst_88 {dimension_numbers = #tpu.dot_dimension_numbers<[2], [2], [0], [0], [0, 1, 0, 0, 1, 0], [1], [1]>} : vector<16x4x8xf32>, vector<16x4x8xf32>, vector<4x16x16xf32> -> vector<4x16x16xf32>
    "tpu.trace_stop"() : () -> ()
    %cst_89 = arith.constant 0.353553385 : f32
    %179 = vector.broadcast %cst_89 : f32 to vector<4x16x16xf32>
    %180 = arith.mulf %178, %179 : vector<4x16x16xf32>
    %181 = vector.shape_cast %4 : vector<16x16xf32> to vector<1x16x16xf32>
    %182 = vector.broadcast %181 : vector<1x16x16xf32> to vector<4x16x16xf32>
    %183 = arith.addf %180, %182 : vector<4x16x16xf32>
    %cst_90 = arith.constant dense<0xFF800000> : vector<4x16xf32>
    %184 = vector.multi_reduction <maximumf>, %183, %cst_90 [2] : vector<4x16x16xf32> to vector<4x16xf32>
    %185 = vector.shape_cast %184 : vector<4x16xf32> to vector<4x16x1xf32>
    %186 = vector.broadcast %185 : vector<4x16x1xf32> to vector<4x16x16xf32>
    %187 = arith.subf %183, %186 : vector<4x16x16xf32>
    %188 = math.exp %187 : vector<4x16x16xf32>
    %cst_91 = arith.constant dense<0.000000e+00> : vector<4x16xf32>
    %189 = vector.multi_reduction <add>, %188, %cst_91 [2] : vector<4x16x16xf32> to vector<4x16xf32>
    %190 = vector.shape_cast %189 : vector<4x16xf32> to vector<4x16x1xf32>
    %191 = tpu.reciprocal %190 {approx = true} : vector<4x16x1xf32> -> vector<4x16x1xf32>
    %192 = vector.broadcast %191 : vector<4x16x1xf32> to vector<4x16x16xf32>
    %193 = arith.mulf %188, %192 : vector<4x16x16xf32>
    "tpu.trace_start"() <{level = 10 : i32, message = "hqk,khd->qhd"}> : () -> ()
    %cst_92 = arith.constant dense<0.000000e+00> : vector<4x8x16xf32>
    %194 = tpu.matmul %177, %193, %cst_92 {dimension_numbers = #tpu.dot_dimension_numbers<[0], [2], [2], [1], [0, 1, 0, 2, 1, 1], [1], [0]>} : vector<16x4x8xf32>, vector<4x16x16xf32>, vector<4x8x16xf32> -> vector<4x8x16xf32>
    %195 = tpu.transpose %194, [2, 0, 1] : vector<4x8x16xf32> -> vector<16x4x8xf32>
    "tpu.trace_stop"() : () -> ()
    %196 = vector.shape_cast %195 : vector<16x4x8xf32> to vector<16x32xf32>
    %c7_93 = arith.constant 7 : index
    %c0_94 = arith.constant 0 : index
    %c0_95 = arith.constant 0 : index
    %197 = vector.load %arg2[%c7_93, %c0_94, %c0_95] : memref<8x32x32xf32, #tpu.memory_space<vmem>>, vector<1x32x32xf32>
    %198 = vector.shape_cast %197 : vector<1x32x32xf32> to vector<32x32xf32>
    %cst_96 = arith.constant dense<0.000000e+00> : vector<16x32xf32>
    %199 = tpu.matmul %196, %198, %cst_96 {dimension_numbers = #tpu.dot_dimension_numbers<[1], [0], [0], [1], [0, 0, 1, 1], [], []>} : vector<16x32xf32>, vector<32x32xf32>, vector<16x32xf32> -> vector<16x32xf32>
    %200 = vector.broadcast %133 : vector<1x32xf32> to vector<16x32xf32>
    %201 = arith.addf %199, %200 : vector<16x32xf32>
    %202 = arith.addf %137, %201 : vector<16x32xf32>
    %cst_97 = arith.constant dense<0.000000e+00> : vector<16xf32>
    %203 = vector.multi_reduction <add>, %202, %cst_97 [1] : vector<16x32xf32> to vector<16xf32>
    %204 = vector.shape_cast %203 : vector<16xf32> to vector<16x1xf32>
    %cst_98 = arith.constant 3.200000e+01 : f32
    %205 = vector.broadcast %cst_98 : f32 to vector<16x1xf32>
    %206 = arith.divf %204, %205 : vector<16x1xf32>
    %207 = vector.broadcast %206 : vector<16x1xf32> to vector<16x32xf32>
    %208 = arith.subf %202, %207 : vector<16x32xf32>
    %209 = arith.mulf %208, %208 : vector<16x32xf32>
    %cst_99 = arith.constant dense<0.000000e+00> : vector<16xf32>
    %210 = vector.multi_reduction <add>, %209, %cst_99 [1] : vector<16x32xf32> to vector<16xf32>
    %211 = vector.shape_cast %210 : vector<16xf32> to vector<16x1xf32>
    %cst_100 = arith.constant 3.200000e+01 : f32
    %212 = vector.broadcast %cst_100 : f32 to vector<16x1xf32>
    %213 = arith.divf %211, %212 : vector<16x1xf32>
    %214 = vector.broadcast %206 : vector<16x1xf32> to vector<16x32xf32>
    %215 = arith.subf %202, %214 : vector<16x32xf32>
    %cst_101 = arith.constant 9.99999974E-6 : f32
    %216 = vector.broadcast %cst_101 : f32 to vector<16x1xf32>
    %217 = arith.addf %213, %216 : vector<16x1xf32>
    %218 = math.rsqrt %217 : vector<16x1xf32>
    %219 = vector.broadcast %218 : vector<16x1xf32> to vector<16x32xf32>
    %220 = arith.mulf %215, %219 : vector<16x32xf32>
    %221 = vector.broadcast %134 : vector<1x32xf32> to vector<16x32xf32>
    %222 = arith.mulf %220, %221 : vector<16x32xf32>
    %223 = vector.broadcast %135 : vector<1x32xf32> to vector<16x32xf32>
    %224 = arith.addf %222, %223 : vector<16x32xf32>
    %c1_102 = arith.constant 1 : index
    %c0_103 = arith.constant 0 : index
    %c0_104 = arith.constant 0 : index
    %225 = vector.load %arg3[%c1_102, %c0_103, %c0_104] : memref<2x32x128xf32, #tpu.memory_space<vmem>>, vector<1x32x128xf32>
    %226 = vector.shape_cast %225 : vector<1x32x128xf32> to vector<32x128xf32>
    %cst_105 = arith.constant dense<0.000000e+00> : vector<16x128xf32>
    %227 = tpu.matmul %224, %226, %cst_105 {dimension_numbers = #tpu.dot_dimension_numbers<[1], [0], [0], [1], [0, 0, 1, 1], [], []>} : vector<16x32xf32>, vector<32x128xf32>, vector<16x128xf32> -> vector<16x128xf32>
    %c1_106 = arith.constant 1 : index
    %c0_107 = arith.constant 0 : index
    %c0_108 = arith.constant 0 : index
    %228 = vector.load %arg4[%c1_106, %c0_107, %c0_108] : memref<2x1x128xf32, #tpu.memory_space<vmem>>, vector<1x1x128xf32>
    %229 = vector.shape_cast %228 : vector<1x1x128xf32> to vector<1x128xf32>
    %230 = vector.broadcast %229 : vector<1x128xf32> to vector<16x128xf32>
    %231 = arith.addf %227, %230 : vector<16x128xf32>
    %cst_109 = arith.constant 5.000000e-01 : f32
    %232 = vector.broadcast %cst_109 : f32 to vector<16x128xf32>
    %233 = arith.mulf %232, %231 : vector<16x128xf32>
    %cst_110 = arith.constant 4.471500e-02 : f32
    %234 = vector.broadcast %cst_110 : f32 to vector<16x128xf32>
    %235 = arith.mulf %234, %231 : vector<16x128xf32>
    %236 = arith.mulf %235, %231 : vector<16x128xf32>
    %237 = arith.mulf %236, %231 : vector<16x128xf32>
    %238 = arith.addf %231, %237 : vector<16x128xf32>
    %cst_111 = arith.constant 0.797884583 : f32
    %239 = vector.broadcast %cst_111 : f32 to vector<16x128xf32>
    %240 = arith.mulf %239, %238 : vector<16x128xf32>
    %241 = math.tanh %240 : vector<16x128xf32>
    %cst_112 = arith.constant 1.000000e+00 : f32
    %242 = vector.broadcast %cst_112 : f32 to vector<16x128xf32>
    %243 = arith.addf %242, %241 : vector<16x128xf32>
    %244 = arith.mulf %233, %243 : vector<16x128xf32>
    %c1_113 = arith.constant 1 : index
    %c0_114 = arith.constant 0 : index
    %c0_115 = arith.constant 0 : index
    %245 = vector.load %arg5[%c1_113, %c0_114, %c0_115] : memref<2x128x32xf32, #tpu.memory_space<vmem>>, vector<1x128x32xf32>
    %246 = vector.shape_cast %245 : vector<1x128x32xf32> to vector<128x32xf32>
    %cst_116 = arith.constant dense<0.000000e+00> : vector<16x32xf32>
    %247 = tpu.matmul %244, %246, %cst_116 {dimension_numbers = #tpu.dot_dimension_numbers<[1], [0], [0], [1], [0, 0, 1, 1], [], []>} : vector<16x128xf32>, vector<128x32xf32>, vector<16x32xf32> -> vector<16x32xf32>
    %248 = vector.broadcast %136 : vector<1x32xf32> to vector<16x32xf32>
    %249 = arith.addf %247, %248 : vector<16x32xf32>
    %250 = arith.addf %202, %249 : vector<16x32xf32>
    %c18 = arith.constant 18 : index
    %c0_117 = arith.constant 0 : index
    %251 = vector.load %arg6[%c18, %c0_117] : memref<20x32xf32, #tpu.memory_space<vmem>>, vector<1x32xf32>
    %c19 = arith.constant 19 : index
    %c0_118 = arith.constant 0 : index
    %252 = vector.load %arg6[%c19, %c0_118] : memref<20x32xf32, #tpu.memory_space<vmem>>, vector<1x32xf32>
    %cst_119 = arith.constant dense<0.000000e+00> : vector<16xf32>
    %253 = vector.multi_reduction <add>, %250, %cst_119 [1] : vector<16x32xf32> to vector<16xf32>
    %254 = vector.shape_cast %253 : vector<16xf32> to vector<16x1xf32>
    %cst_120 = arith.constant 3.200000e+01 : f32
    %255 = vector.broadcast %cst_120 : f32 to vector<16x1xf32>
    %256 = arith.divf %254, %255 : vector<16x1xf32>
    %257 = vector.broadcast %256 : vector<16x1xf32> to vector<16x32xf32>
    %258 = arith.subf %250, %257 : vector<16x32xf32>
    %259 = arith.mulf %258, %258 : vector<16x32xf32>
    %cst_121 = arith.constant dense<0.000000e+00> : vector<16xf32>
    %260 = vector.multi_reduction <add>, %259, %cst_121 [1] : vector<16x32xf32> to vector<16xf32>
    %261 = vector.shape_cast %260 : vector<16xf32> to vector<16x1xf32>
    %cst_122 = arith.constant 3.200000e+01 : f32
    %262 = vector.broadcast %cst_122 : f32 to vector<16x1xf32>
    %263 = arith.divf %261, %262 : vector<16x1xf32>
    %264 = vector.broadcast %256 : vector<16x1xf32> to vector<16x32xf32>
    %265 = arith.subf %250, %264 : vector<16x32xf32>
    %cst_123 = arith.constant 9.99999974E-6 : f32
    %266 = vector.broadcast %cst_123 : f32 to vector<16x1xf32>
    %267 = arith.addf %263, %266 : vector<16x1xf32>
    %268 = math.rsqrt %267 : vector<16x1xf32>
    %269 = vector.broadcast %268 : vector<16x1xf32> to vector<16x32xf32>
    %270 = arith.mulf %265, %269 : vector<16x32xf32>
    %271 = vector.broadcast %251 : vector<1x32xf32> to vector<16x32xf32>
    %272 = arith.mulf %270, %271 : vector<16x32xf32>
    %273 = vector.broadcast %252 : vector<1x32xf32> to vector<16x32xf32>
    %274 = arith.addf %272, %273 : vector<16x32xf32>
    %c0_124 = arith.constant 0 : index
    %c0_125 = arith.constant 0 : index
    %275 = vector.load %arg7[%c0_124, %c0_125] : memref<16x32xf32, #tpu.memory_space<vmem>>, vector<16x32xf32>
    tpu.vector_store %arg7[%c0_124, %c0_125], %274 {strides = array<i32>} : memref<16x32xf32, #tpu.memory_space<vmem>>, vector<16x32xf32>,
    return
  }
}

</mosaic_0001>

<bundles_post_ra>
// kernel: tpu_custom_call.1
= control target key start
LH: loop header
LB: loop body
LE: loop exit
PB: predicated region body
PF: predicated region fallthrough
CT: control target
= control target key end

     0   :  { %12 = vsyncpa [#allocation3], 0  ;;  %s4035_s0 = inlined_call_operand.hbm [shape: f32[2,16,32], index: 0, kind: input, shape index: {}]   ;;  %s4036_s1 = inlined_call_operand.hbm [shape: f32[16,16], index: 1, kind: input, shape index: {}]   ;;  %s4037_s2 = inlined_call_operand.vmem [shape: f32[8,32,32], index: 2, kind: input, shape index: {}]   ;;  %s4038_s3 = inlined_call_operand.vmem [shape: f32[2,32,128], index: 3, kind: input, shape index: {}]   ;;  %s4039_s4 = inlined_call_operand.vmem [shape: f32[2,1,128], index: 4, kind: input, shape index: {}]   ;;  %s4040_s5 = inlined_call_operand.vmem [shape: f32[2,128,32], index: 5, kind: input, shape index: {}]   ;;  %s4041_s6 = inlined_call_operand.hbm [shape: f32[20,32], index: 6, kind: input, shape index: {}]   ;;  %s4042_s7 = inlined_call_operand.hbm [shape: f32[16,32], index: 7, kind: output, shape index: {}]  }
   0x1   :  { %13 = vsyncpa [#allocation6], 0 }
   0x2   :  { %14 = vsyncpa [#allocation4], 0  ;;  %s32_s26 = sshll.u32 %s4036_s1, 4  ;;  %s3271_s27 = smov [#allocation5]   ;;  %s33_s26 = int_to_ptr.hbm [resolvable:$true] %s32_s26 }
   0x3   :  { %s34_s28 = sshll.u32 %s3271_s27, 4  ;;  %s19_s8 = sshll.u32 %s4035_s0, 4  ;;  %s35_s28 = int_to_ptr.vmem [resolvable:$true] %s34_s28  ;;  %s20_s8 = int_to_ptr.hbm [resolvable:$true] %s19_s8 }
   0x4   :  { %s3272_s9 = smov 128   ;;  %s3273_s10 = smov 8  }
   0x5   :  { %40 = dma.hbm_to_vmem [thread:$0]  %s33_s26, 256, %s35_s28, [#allocation6], %s3272_s9, %s3272_s9, %s3273_s10  }
   0x6   :  { %s3274_s11 = smov [#allocation2]   ;;  %s53_s1 = sshll.u32 %s4041_s6, 4  ;;  %s54_s1 = int_to_ptr.hbm [resolvable:$true] %s53_s1 }
   0x7   :  { %s21_s12 = sshll.u32 %s3274_s11, 4  ;;  %s3275_s0 = smov [#allocation7]   ;;  %s22_s12 = int_to_ptr.vmem [resolvable:$true] %s21_s12 }
   0x8   :  { %27 = dma.hbm_to_vmem [thread:$0]  %s20_s8, 512, %s22_s12, [#allocation3], %s3272_s9, %s3272_s9, %s3273_s10  }
   0x9   :  { %s55_s15 = sshll.u32 %s3275_s0, 4  ;;  %s56_s15 = int_to_ptr.vmem [resolvable:$true] %s55_s15 }
   0xa   :  { %61 = dma.hbm_to_vmem [thread:$0]  %s54_s1, 384, %s56_s15, [#allocation6], %s3272_s9, %s3272_s9, %s3273_s10  }
   0xb   :  { %3265 = dma.done.wait [#allocation3], 512  }
   0xc   :  { %3266 = vsyncadd [#allocation3], 4294966784 }
   0xd   :  { %3267 = dma.done.wait [#allocation6], 640  }
   0xe   :  { %3268 = vsyncadd [#allocation6], 4294966656  ;;  %v74_v0 = vld [vmem:[#allocation2] sm:$0xff]  ;;  %v77_v1 = vld [vmem:[#allocation2 + $0x10] sm:$0xff]  ;;  %vm92_vm0 = vcmask 261120   ;;  %v3276_v8 = vmov 32.0  }
   0xf   :  { %v75_v2 = vld [vmem:[#allocation2 + $0x8] sm:$0xff]  ;;  %v3343_v3 = vadd.f32 %v77_v1, %v74_v0  ;;  %v78_v4 = vld [vmem:[#allocation2 + $0x18] sm:$0xff]  ;;  %3071 = vrcp.f32 %v3276_v8  ;;  %v152_v28 = vld [vmem:[%s4037_s2 + $0x10] sm:$0xff]  ;;  %s3277_s6 = smov 104   ;;  %s3278_s16 = smov 112   ;;  %vm424_vm8 = vcmask 64512  }
  0x10   :  { %v3347_v6 = vadd.f32 %v78_v4, %v75_v2  ;;  %v153_v25 = vld [vmem:[%s4037_s2 + $0x18] sm:$0xff]  ;;  %v2881_v29 = vld [vmem:[%s4037_s2 + $0x30] sm:$0xff]  ;;  %v151_v31 = vld [vmem:[%s4037_s2 + $0x8] sm:$0xff]  ;;  %s3279_s17 = smov 120   ;;  %vm549_vm9 = vcmask 130048   ;;  %vm1011_vm10 = vcmask 1047556  }
  0x11   :  { %v93_v5 = vsel %vm92_vm0, %v3343_v3, 0.0  ;;  %v2882_v26 = vld [vmem:[%s4037_s2 + $0x38] sm:$0xff]  ;;  %173 = vmatpush.msra.mxu0 %v153_v25  ;;  %v2887_v30 = vld [vmem:[%s4037_s2 + $0x50] sm:$0xff]  ;;  %v2880_v32 = vld [vmem:[%s4037_s2 + $0x28] sm:$0xff]  ;;  %s3282_s18 = smov 16   ;;  %s3283_s19 = smov 24  }
  0x12   :  { %94 = vadd.xlane.f32.xlu0 %v93_v5  ;;  %v96_v7 = vsel %vm92_vm0, %v3347_v6, 0.0  ;;  %v2888_v27 = vld [vmem:[%s4037_s2 + $0x58] sm:$0xff]  ;;  %202 = vmatpush.msra.mxu1 %v2882_v26  ;;  %v2886_v33 = vld [vmem:[%s4037_s2 + $0x48] sm:$0xff]  ;;  %v150_v34 = vld [vmem:[%s4037_s2] sm:$0xff]  ;;  %vm1259_vm11 = vcmask 195584  }
  0x13   :  { %231 = vmatpush.msra.mxu3 %v2888_v27  ;;  %174 = vmatpush.msra.mxu0 %v152_v28  ;;  %v2879_v35 = vld [vmem:[%s4037_s2 + $0x20] sm:$0xff]  ;;  %v3049_v51 = vld [vmem:[#allocation7] ss:$0 sm:$0xff]  ;;  %v3050_v55 = vld [vmem:[#allocation7 + $0x1] ss:$0 sm:$0xff] }
  0x14   :  { %203 = vmatpush.msra.mxu1 %v2881_v29  ;;  %v2885_v36 = vld [vmem:[%s4037_s2 + $0x40] sm:$0xff]  ;;  %v3051_v1 = vld [vmem:[#allocation7 + $0x2] ss:$0 sm:$0xff] }
  0x15   :  { %v3072_v9 = vpop.eup %3071  ;;  %232 = vmatpush.msra.mxu3 %v2887_v30  ;;  %175 = vmatpush.msra.mxu0 %v151_v31 }
  0x16   :  { %v100_v10 = vmul.f32 32.0, %v3072_v9  ;;  %vm104_vm1 = vweird.f32 %v3072_v9  ;;  %204 = vmatpush.msra.mxu1 %v2880_v32 }
  0x17   :  { %233 = vmatpush.msra.mxu3 %v2886_v33  ;;  %176 = vmatpush.msra.mxu0 %v150_v34 }
  0x18   :  { %v101_v11 = vsub.f32 1.0, %v100_v10  ;;  %205 = vmatpush.msra.mxu1 %v2879_v35 }
  0x19   :  { %234 = vmatpush.msra.mxu3 %v2885_v36 }
  0x1a   :  { %97 = vadd.xlane.f32.xlu0 %v96_v7  ;;  %v102_v12 = vmul.f32 %v3072_v9, %v101_v11  ;;  %v3052_v7 = vld [vmem:[#allocation7 + $0x3] ss:$0 sm:$0xff] }
  0x1c   :  { %v103_v13 = vadd.f32 %v3072_v9, %v102_v12 }
  0x1e   :  { %v3351_v14 = vsel %vm104_vm1, %v3072_v9, %v103_v13 }
  0x85   :  { %v95_v15 = vpop.xlane.xlu0 %94 }
  0x86   :  { %v106_v16 = vmul.f32 %v3351_v14, %v95_v15 }
  0x88   :  { %v108_v17 = vsub.f32 %v3343_v3, %v106_v16  ;;  %v3053_v16 = vld [vmem:[#allocation7 + $0x4] ss:$0 sm:$0xff] }
  0x8a   :  { %v110_v18 = vmul.f32 %v108_v17, %v108_v17 }
  0x8c   :  { %v112_v19 = vsel %vm92_vm0, %v110_v18, 0.0 }
  0x8d   :  { %113 = vadd.xlane.f32.xlu1 %v112_v19  ;;  %v98_v20 = vpop.xlane.xlu0 %97 }
  0x8e   :  { %v107_v21 = vmul.f32 %v3351_v14, %v98_v20 }
  0x90   :  { %v3358_v22 = vsub.f32 %v3347_v6, %v107_v21 }
  0x92   :  { %v111_v23 = vmul.f32 %v3358_v22, %v3358_v22 }
  0x94   :  { %v115_v24 = vsel %vm92_vm0, %v111_v23, 0.0 }
  0x95   :  { %116 = vadd.xlane.f32.xlu1 %v115_v24 }
 0x100   :  { %v114_v37 = vpop.xlane.xlu1 %113 }
 0x101   :  { %v118_v38 = vmul.f32 %v114_v37, %v3351_v14 }
 0x103   :  { %v120_v39 = vadd.f32 1e-05, %v118_v38 }
 0x105   :  { %3073 = vrsqrt.f32 %v120_v39  ;;  %vm128_vm3 = vweird.f32 %v120_v39 }
 0x108   :  { %v117_v40 = vpop.xlane.xlu1 %116 }
 0x109   :  { %v119_v41 = vmul.f32 %v117_v40, %v3351_v14 }
 0x10b   :  { %v3074_v42 = vpop.eup %3073  ;;  %v121_v43 = vadd.f32 1e-05, %v119_v41 }
 0x10c   :  { %v123_v44 = vmul.f32 %v3074_v42, %v120_v39  ;;  %vm129_vm2 = vweird.f32 %v3074_v42 }
 0x10d   :  { %3075 = vrsqrt.f32 %v121_v43  ;;  %vm130_vm4 = vmor %vm128_vm3, %vm129_vm2  ;;  %vm138_vm6 = vweird.f32 %v121_v43 }
 0x10e   :  { %v124_v45 = vmul.f32 %v3074_v42, %v123_v44 }
 0x110   :  { %v125_v46 = vmul.f32 0.5, %v124_v45  ;;  %v79_v45 = vld [vmem:[#allocation5] sm:$0xff] }
 0x112   :  { %v126_v47 = vsub.f32 1.5, %v125_v46 }
 0x113   :  { %v3076_v48 = vpop.eup %3075 }
 0x114   :  { %v127_v49 = vmul.f32 %v3074_v42, %v126_v47  ;;  %v133_v50 = vmul.f32 %v3076_v48, %v121_v43  ;;  %vm139_vm5 = vweird.f32 %v3076_v48 }
 0x115   :  { %vm140_vm7 = vmor %vm138_vm6, %vm139_vm5 }
 0x116   :  { %v131_v52 = vsel %vm130_vm4, %v3074_v42, %v127_v49  ;;  %v134_v53 = vmul.f32 %v3076_v48, %v133_v50  ;;  %v80_v50 = vld [vmem:[#allocation5 + $0x8] sm:$0xff] }
 0x117   :  { %v142_v54 = vmul.f32 %v131_v52, %v108_v17 }
 0x118   :  { %v135_v56 = vmul.f32 0.5, %v134_v53 }
 0x119   :  { %v145_v57 = vmul.f32 %v3049_v51, %v142_v54 }
 0x11a   :  { %v136_v58 = vsub.f32 1.5, %v135_v56 }
 0x11b   :  { %v148_v59 = vadd.f32 %v3050_v55, %v145_v57 }
 0x11c   :  { %v137_v60 = vmul.f32 %v3076_v48, %v136_v58 }
 0x11d   :  { %2877 = vmatmul.msk.f32.vlgmr.msra.gmra.mxu0 %vm92_vm0, %v148_v59  ;;  %2883 = vmatmul.msk.f32.vlgmr.msra.gmra.mxu1 %vm92_vm0, %v148_v59 }
 0x11e   :  { %v141_v61 = vsel %vm140_vm7, %v3076_v48, %v137_v60  ;;  %2889 = vmatmul.msk.f32.vlgmr.msra.gmra.mxu3 %vm92_vm0, %v148_v59 }
 0x11f   :  { %v143_v62 = vmul.f32 %v141_v61, %v3358_v22 }
 0x121   :  { %v146_v63 = vmul.f32 %v3049_v51, %v143_v62 }
 0x123   :  { %v149_v0 = vadd.f32 %v3050_v55, %v146_v63 }
 0x125   :  { %2878 = vmatmul.msk.f32.gmra.mxu0 %vm92_vm0, %v149_v0  ;;  %2884 = vmatmul.msk.f32.gmra.mxu1 %vm92_vm0, %v149_v0 }
 0x126   :  { %2890 = vmatmul.msk.f32.gmra.mxu3 %vm92_vm0, %v149_v0 }
 0x19a   :  { %v178_v2 = vpop.f32.mrf.mxu0  ;;  %v207_v4 = vpop.f32.mrf.mxu1 }
 0x19b   :  { %v179_v5 = vadd.f32 %v3051_v1, %v178_v2  ;;  %v208_v10 = vadd.f32 %v3052_v7, %v207_v4 }
 0x19d   :  { %252 = vrot.lane.b32.xlu0 %v179_v5, %s3277_s6  ;;  %248 = vrot.lane.b32.xlu2 %v179_v5, %s3278_s16 }
 0x19e   :  { %244 = vrot.lane.b32.xlu1 %v179_v5, %s3279_s17 }
 0x1a1   :  { %v236_v15 = vpop.f32.mrf.mxu3 }
 0x1a2   :  { %v181_v8 = vpop.f32.mrf.mxu0  ;;  %v210_v9 = vpop.f32.mrf.mxu1  ;;  %v3417_v17 = vadd.f32 %v3053_v16, %v236_v15 }
 0x1a3   :  { %v182_v11 = vadd.f32 %v3051_v1, %v181_v8  ;;  %v211_v12 = vadd.f32 %v3052_v7, %v210_v9 }
 0x1a5   :  { %v3011_v13 = vpack.i.bf16 %v211_v12, %v208_v10 }
 0x1a6   :  { %250 = vrot.lane.b32.xlu1 %v182_v11, %s3278_s16 }
 0x1a7   :  { %3012 = vrot.lane.b32.xlu0 %v3011_v13, %s3277_s6  ;;  %3002 = vrot.lane.b32.xlu2 %v3011_v13, %s3279_s17 }
 0x1a9   :  { %v239_v18 = vpop.f32.mrf.mxu3 }
 0x1aa   :  { %v3421_v19 = vadd.f32 %v3053_v16, %v239_v18 }
 0x1ae   :  { %254 = vrot.lane.b32.xlu1 %v182_v11, %s3277_s6 }
 0x1af   :  { %3007 = vrot.lane.b32.xlu2 %v3011_v13, %s3278_s16  ;;  %246 = vrot.lane.b32.xlu0 %v182_v11, %s3279_s17 }
 0x1b6   :  { %278 = vrot.lane.b32.xlu1 %v3417_v17, %s3279_s17 }
 0x1be   :  { %280 = vrot.lane.b32.xlu1 %v3421_v19, %s3279_s17 }
 0x1f7   :  { %v249_v20 = vpop.permute.xlu2 %248 }
 0x201   :  { %v3003_v21 = vpop.permute.xlu2 %3002 }
 0x202   :  { %v3004_v22 = vunpack.i.l.bf16 %v3003_v21  ;;  %v3005_v24 = vunpack.i.h.bf16 %v3003_v21 }
 0x204   :  { %v3016_v23 = vpack.i.bf16 %v3004_v22, %v208_v10  ;;  %v3018_v27 = vpack.i.bf16 %v3005_v24, %v211_v12 }
 0x206   :  { %3017 = vxpose.xlu2.b32.start [1/2] (short) (narrow) %v3016_v23, 8 }
 0x209   :  { %v3008_v25 = vpop.permute.xlu2 %3007 }
 0x20a   :  { %v3009_v26 = vunpack.i.l.bf16 %v3008_v25  ;;  %v3010_v29 = vunpack.i.h.bf16 %v3008_v25 }
 0x20c   :  { %360 = vxpose.xlu0.b32.start [1/2] (short) (narrow) %v3009_v26, 8 }
 0x20e   :  { %3019 = vxpose.xlu2.b32.end [2/2] (short) (narrow) %v3018_v27, 8 }
 0x20f   :  { %v253_v28 = vpop.permute.xlu0 %252 }
 0x210   :  { %v245_v33 = vpop.permute.xlu1 %244 }
 0x214   :  { %361 = vxpose.xlu0.b32.end [2/2] (short) (narrow) %v3010_v29, 8 }
 0x216   :  { %638 = vxpose.xlu2.b32.start [1/2] (short) (narrow) %v3417_v17, 8 }
 0x218   :  { %v251_v34 = vpop.permute.xlu1 %250 }
 0x219   :  { %v3013_v30 = vpop.permute.xlu0 %3012 }
 0x21a   :  { %v3014_v31 = vunpack.i.l.bf16 %v3013_v30  ;;  %v3015_v32 = vunpack.i.h.bf16 %v3013_v30 }
 0x21c   :  { %392 = vxpose.xlu1.b32.start [1/2] (short) (narrow) %v3014_v31, 8 }
 0x21e   :  { %639 = vxpose.xlu2.b32.end [2/2] (short) (narrow) %v3421_v19, 8 }
 0x220   :  { %v255_v38 = vpop.permute.xlu1 %254 }
 0x221   :  { %v247_v39 = vpop.permute.xlu0 %246 }
 0x224   :  { %393 = vxpose.xlu1.b32.end [2/2] (short) (narrow) %v3015_v32, 8 }
 0x228   :  { %v3431_v40 = vpop.permute.xlu1 %278 }
 0x230   :  { %v3435_v42 = vpop.permute.xlu1 %280 }
 0x282   :  { %284 = vrot.lane.b32.xlu0 %v3417_v17, %s3278_s16 }
 0x29f   :  { %v3020_v35 = vpop.trf.xlu2 }
 0x2a0   :  { %v3024_v36 = vunpack.i.h.bf16 %v3020_v35  ;;  %v3021_v37 = vunpack.i.l.bf16 %v3020_v35 }
 0x2a2   :  { %444 = vmatpush.msrb.mxu3 %v3021_v37 }
 0x2a3   :  { %2891 = vmatmul.msk.f32.vlgmr.msrb.gmra.mxu3 %vm424_vm8, %v179_v5 }
 0x2a4   :  { %471 = vmatpush.msra.mxu3 %v3024_v36 }
 0x2ab   :  { %2892 = vmatmul.msk.f32.gmra.mxu3 %vm424_vm8, %v182_v11 }
 0x2b0   :  { %v376_v41 = vpop.trf.xlu0 }
 0x2b1   :  { %498 = vmatpush.msrb.mxu0 %v376_v41 }
 0x2b2   :  { %2895 = vmatmul.msk.f32.vlgmr.msrb.gmra.mxu0 %vm424_vm8, %v249_v20  ;;  %v3455_v20 = vpop.trf.xlu2 }
 0x2b3   :  { %2893 = vmatmul.msk.f32.vlgmr.msra.gmra.mxu3 %vm424_vm8, %v245_v33 }
 0x2ba   :  { %2896 = vmatmul.msk.f32.gmra.mxu0 %vm424_vm8, %v251_v34 }
 0x2bb   :  { %2894 = vmatmul.msk.f32.gmra.mxu3 %vm424_vm8, %v247_v39 }
 0x2c0   :  { %v408_v43 = vpop.trf.xlu1 }
 0x2c1   :  { %525 = vmatpush.msrb.mxu1 %v408_v43 }
 0x2c2   :  { %2897 = vmatmul.msk.f32.vlgmr.msrb.gmra.mxu1 %vm424_vm8, %v253_v28 }
 0x2ca   :  { %2898 = vmatmul.msk.f32.gmra.mxu1 %vm424_vm8, %v255_v38 }
 0x2f4   :  { %v285_v18 = vpop.permute.xlu0 %284 }
 0x326   :  { %v446_v44 = vpop.f32.mrf.mxu3 }
 0x327   :  { %v533_v46 = vmul.f32 0.35355338, %v446_v44 }
 0x329   :  { %v541_v47 = vadd.f32 %v533_v46, %v79_v45 }
 0x32b   :  { %v550_v48 = vsel %vm549_vm9, %v541_v47, -inf }
 0x32c   :  { %551 = vmax.xlane.f32.xlu0 %v550_v48 }
 0x32e   :  { %v449_v49 = vpop.f32.mrf.mxu3 }
 0x32f   :  { %v534_v51 = vmul.f32 0.35355338, %v449_v49  ;;  %v500_v52 = vpop.f32.mrf.mxu0 }
 0x330   :  { %v537_v54 = vmul.f32 0.35355338, %v500_v52 }
 0x331   :  { %v542_v53 = vadd.f32 %v534_v51, %v80_v50 }
 0x332   :  { %v545_v57 = vadd.f32 %v537_v54, %v79_v45 }
 0x333   :  { %v553_v55 = vsel %vm549_vm9, %v542_v53, -inf }
 0x334   :  { %554 = vmax.xlane.f32.xlu2 %v553_v55  ;;  %v562_v62 = vsel %vm549_vm9, %v545_v57, -inf }
 0x336   :  { %v473_v58 = vpop.f32.mrf.mxu3 }
 0x337   :  { %v503_v56 = vpop.f32.mrf.mxu0  ;;  %v535_v61 = vmul.f32 0.35355338, %v473_v58 }
 0x338   :  { %v538_v59 = vmul.f32 0.35355338, %v503_v56 }
 0x339   :  { %v543_v1 = vadd.f32 %v535_v61, %v79_v45 }
 0x33a   :  { %v546_v60 = vadd.f32 %v538_v59, %v80_v50 }
 0x33b   :  { %v556_v4 = vsel %vm549_vm9, %v543_v1, -inf }
 0x33c   :  { %563 = vmax.xlane.f32.xlu2 %v562_v62  ;;  %v565_v63 = vsel %vm549_vm9, %v546_v60, -inf }
 0x33d   :  { %566 = vmax.xlane.f32.xlu1 %v565_v63 }
 0x33e   :  { %v476_v8 = vpop.f32.mrf.mxu3 }
 0x33f   :  { %v527_v0 = vpop.f32.mrf.mxu1  ;;  %v536_v11 = vmul.f32 0.35355338, %v476_v8 }
 0x340   :  { %v539_v2 = vmul.f32 0.35355338, %v527_v0 }
 0x341   :  { %v544_v15 = vadd.f32 %v536_v11, %v80_v50 }
 0x342   :  { %v547_v7 = vadd.f32 %v539_v2, %v79_v45 }
 0x343   :  { %v559_v16 = vsel %vm549_vm9, %v544_v15, -inf }
 0x344   :  { %557 = vmax.xlane.f32.xlu2 %v556_v4  ;;  %v568_v12 = vsel %vm549_vm9, %v547_v7, -inf }
 0x347   :  { %v530_v5 = vpop.f32.mrf.mxu1 }
 0x348   :  { %v540_v9 = vmul.f32 0.35355338, %v530_v5 }
 0x34a   :  { %v548_v10 = vadd.f32 %v540_v9, %v80_v50 }
 0x34c   :  { %569 = vmax.xlane.f32.xlu2 %v568_v12  ;;  %v571_v13 = vsel %vm549_vm9, %v548_v10, -inf }
 0x34d   :  { %572 = vmax.xlane.f32.xlu0 %v571_v13 }
 0x354   :  { %560 = vmax.xlane.f32.xlu2 %v559_v16 }
 0x356   :  { %290 = vrot.lane.b32.xlu1 %v3417_v17, %s3277_s6 }
 0x361   :  { %292 = vrot.lane.b32.xlu0 %v3421_v19, %s3277_s6 }
 0x36c   :  { %286 = vrot.lane.b32.xlu2 %v3421_v19, %s3278_s16 }
 0x39f   :  { %v552_v21 = vpop.xlane.xlu0 %551 }
 0x3a0   :  { %v574_v22 = vsub.f32 %v541_v47, %v552_v21 }
 0x3a2   :  { %v582_v23 = vmul.f32 1.442695, %v574_v22 }
 0x3a4   :  { %3077 = vpow2.f32 %v582_v23 }
 0x3a7   :  { %v555_v24 = vpop.xlane.xlu2 %554 }
 0x3a8   :  { %v575_v25 = vsub.f32 %v542_v53, %v555_v24 }
 0x3aa   :  { %v3457_v26 = vpop.eup %3077  ;;  %v584_v27 = vmul.f32 1.442695, %v575_v25 }
 0x3ab   :  { %v598_v17 = vsel %vm549_vm9, %v3457_v26, 0.0 }
 0x3ac   :  { %3079 = vpow2.f32 %v584_v27  ;;  %599 = vadd.xlane.f32.xlu2 %v598_v17 }
 0x3af   :  { %v564_v28 = vpop.xlane.xlu2 %563 }
 0x3b0   :  { %v578_v29 = vsub.f32 %v545_v57, %v564_v28  ;;  %v567_v32 = vpop.xlane.xlu1 %566 }
 0x3b1   :  { %v579_v36 = vsub.f32 %v546_v60, %v567_v32 }
 0x3b2   :  { %v3080_v19 = vpop.eup %3079  ;;  %v590_v30 = vmul.f32 1.442695, %v578_v29 }
 0x3b3   :  { %v601_v31 = vsel %vm549_vm9, %v3080_v19, 0.0  ;;  %v592_v39 = vmul.f32 1.442695, %v579_v36  ;;  %v3280_v36 = vmov 1983009808  }
 0x3b4   :  { %3081 = vpow2.f32 %v590_v30  ;;  %602 = vadd.xlane.f32.xlu1 %v601_v31 }
 0x3b7   :  { %v558_v33 = vpop.xlane.xlu2 %557 }
 0x3b8   :  { %v576_v34 = vsub.f32 %v543_v1, %v558_v33 }
 0x3ba   :  { %v3462_v35 = vpop.eup %3081  ;;  %v586_v37 = vmul.f32 1.442695, %v576_v34 }
 0x3bb   :  { %v610_v38 = vsel %vm549_vm9, %v3462_v35, 0.0 }
 0x3bc   :  { %3083 = vpow2.f32 %v586_v37  ;;  %611 = vadd.xlane.f32.xlu2 %v610_v38  ;;  %v1016_v37 = vunpack.c.l.s4 %v3280_v36 }
 0x3bd   :  { %3085 = vpow2.f32 %v592_v39 }
 0x3be   :  { %v3492_v39 = vunpack.c.0.s8 %v1016_v37 }
 0x3bf   :  { %v570_v41 = vpop.xlane.xlu2 %569 }
 0x3c0   :  { %v580_v43 = vsub.f32 %v547_v7, %v570_v41  ;;  %v573_v44 = vpop.xlane.xlu0 %572 }
 0x3c1   :  { %v581_v45 = vsub.f32 %v548_v10, %v573_v44 }
 0x3c2   :  { %v3466_v46 = vpop.eup %3083  ;;  %v594_v47 = vmul.f32 1.442695, %v580_v43 }
 0x3c3   :  { %v596_v48 = vmul.f32 1.442695, %v581_v45  ;;  %v604_v49 = vsel %vm549_vm9, %v3466_v46, 0.0  ;;  %v3086_v51 = vpop.eup %3085  ;;  %v3281_v45 = vmov 1934713408  }
 0x3c4   :  { %3087 = vpow2.f32 %v594_v47  ;;  %605 = vadd.xlane.f32.xlu1 %v604_v49  ;;  %v613_v57 = vsel %vm549_vm9, %v3086_v51, 0.0 }
 0x3c5   :  { %3089 = vpow2.f32 %v596_v48 }
 0x3c7   :  { %v561_v50 = vpop.xlane.xlu2 %560 }
 0x3c8   :  { %v577_v52 = vsub.f32 %v544_v15, %v561_v50  ;;  %v291_v61 = vpop.permute.xlu1 %290 }
 0x3ca   :  { %v3088_v53 = vpop.eup %3087  ;;  %v588_v54 = vmul.f32 1.442695, %v577_v52 }
 0x3cb   :  { %v3090_v55 = vpop.eup %3089  ;;  %v616_v56 = vsel %vm549_vm9, %v3088_v53, 0.0 }
 0x3cc   :  { %3091 = vpow2.f32 %v588_v54  ;;  %617 = vadd.xlane.f32.xlu2 %v616_v56  ;;  %614 = vadd.xlane.f32.xlu1 %v613_v57  ;;  %v619_v58 = vsel %vm549_vm9, %v3090_v55, 0.0 }
 0x3cd   :  { %620 = vadd.xlane.f32.xlu0 %v619_v58 }
 0x3cf   :  { %v287_v63 = vpop.permute.xlu2 %286 }
 0x3d2   :  { %v3092_v59 = vpop.eup %3091 }
 0x3d3   :  { %v607_v60 = vsel %vm549_vm9, %v3092_v59, 0.0  ;;  %v293_v62 = vpop.permute.xlu0 %292 }
 0x3d5   :  { %608 = vadd.xlane.f32.xlu0 %v607_v60 }
 0x3f5   :  { %734 = vxpose.xlu2.b32.start [1/2] (short) (narrow) %v291_v61, 8 }
 0x3fd   :  { %735 = vxpose.xlu2.b32.end [2/2] (short) (narrow) %v293_v62, 8 }
 0x3fe   :  { %702 = vxpose.xlu0.b32.start [1/2] (short) (narrow) %v285_v18, 8 }
 0x406   :  { %703 = vxpose.xlu0.b32.end [2/2] (short) (narrow) %v287_v63, 8  ;;  %670 = vxpose.xlu1.b32.start [1/2] (short) (narrow) %v3431_v40, 8 }
 0x40e   :  { %671 = vxpose.xlu1.b32.end [2/2] (short) (narrow) %v3435_v42, 8 }
 0x41f   :  { %v600_v0 = vpop.xlane.xlu2 %599 }
 0x427   :  { %v603_v1 = vpop.xlane.xlu1 %602 }
 0x428   :  { %3093 = vrcp.f32 %v603_v1 }
 0x429   :  { %3095 = vrcp.f32 %v600_v0 }
 0x42e   :  { %v3094_v2 = vpop.eup %3093 }
 0x42f   :  { %v631_v4 = vmul.f32 %v3094_v2, %v3080_v19  ;;  %v3096_v5 = vpop.eup %3095  ;;  %v612_v40 = vpop.xlane.xlu2 %611 }
 0x430   :  { %v630_v7 = vmul.f32 %v3096_v5, %v3457_v26 }
 0x431   :  { %2899 = vmatpush.xpose.msk.msra.mxu2 %vm549_vm9, %v631_v4 }
 0x435   :  { %2900 = vmatpush.xpose.msk.msra.mxu2 %vm549_vm9, %v630_v7 }
 0x437   :  { %v606_v8 = vpop.xlane.xlu1 %605 }
 0x438   :  { %2901 = vmatmul.msk.f32.vlgmr.msra.gmra.mxu2 %vm549_vm9, %v3455_v20 }
 0x43f   :  { %v615_v9 = vpop.xlane.xlu1 %614  ;;  %v618_v10 = vpop.xlane.xlu2 %617 }
 0x440   :  { %v621_v42 = vpop.xlane.xlu0 %620  ;;  %3097 = vrcp.f32 %v615_v9 }
 0x441   :  { %3099 = vrcp.f32 %v621_v42 }
 0x442   :  { %3101 = vrcp.f32 %v612_v40 }
 0x443   :  { %3103 = vrcp.f32 %v618_v10 }
 0x446   :  { %v3098_v11 = vpop.eup %3097 }
 0x447   :  { %v3100_v12 = vpop.eup %3099  ;;  %v635_v13 = vmul.f32 %v3098_v11, %v3086_v51 }
 0x448   :  { %v609_v15 = vpop.xlane.xlu0 %608  ;;  %v3102_v16 = vpop.eup %3101  ;;  %v637_v18 = vmul.f32 %v3100_v12, %v3090_v55 }
 0x449   :  { %3105 = vrcp.f32 %v609_v15  ;;  %v3104_v21 = vpop.eup %3103  ;;  %2905 = vmatpush.xpose.msk.msrb.mxu3 %vm549_vm9, %v635_v13  ;;  %v634_v20 = vmul.f32 %v3102_v16, %v3462_v35 }
 0x44a   :  { %3107 = vrcp.f32 %v606_v8  ;;  %2908 = vmatpush.xpose.msk.msra.mxu0 %vm549_vm9, %v637_v18  ;;  %v636_v22 = vmul.f32 %v3104_v21, %v3088_v53 }
 0x44d   :  { %2906 = vmatpush.xpose.msk.msrb.mxu3 %vm549_vm9, %v634_v20 }
 0x44e   :  { %2909 = vmatpush.xpose.msk.msra.mxu0 %vm549_vm9, %v636_v22 }
 0x44f   :  { %v3106_v23 = vpop.eup %3105 }
 0x450   :  { %v633_v24 = vmul.f32 %v3106_v23, %v3092_v59  ;;  %v3108_v25 = vpop.eup %3107 }
 0x451   :  { %v632_v26 = vmul.f32 %v3108_v25, %v3466_v46  ;;  %v1040_v46 = vunpack.c.l.s4 %v3281_v45 }
 0x452   :  { %2902 = vmatpush.xpose.msk.msrb.mxu2 %vm549_vm9, %v633_v24 }
 0x453   :  { %v3499_v54 = vunpack.c.0.s8 %v1040_v46 }
 0x456   :  { %2903 = vmatpush.xpose.msk.msrb.mxu2 %vm549_vm9, %v632_v26 }
 0x48e   :  { %v750_v27 = vpop.trf.xlu2 }
 0x48f   :  { %2910 = vmatmul.msk.f32.vlgmr.msra.gmra.mxu0 %vm549_vm9, %v750_v27 }
 0x4a2   :  { %v718_v17 = vpop.trf.xlu0 }
 0x4a3   :  { %2907 = vmatmul.msk.f32.vlgmr.msrb.gmra.mxu3 %vm549_vm9, %v718_v17 }
 0x4aa   :  { %v686_v28 = vpop.trf.xlu1 }
 0x4ab   :  { %2904 = vmatmul.msk.f32.vlgmr.msrb.gmra.mxu2 %vm549_vm9, %v686_v28 }
 0x4bb   :  { %v792_v29 = vpop.f32.mrf.mxu2 }
 0x4bc   :  { %882 = vxpose.xlu0.b32.start.end [1/1] (short) (narrow) %v792_v29, 16 }
 0x50c   :  { %v879_v19 = vpop.f32.mrf.mxu0 }
 0x50d   :  { %978 = vxpose.xlu2.b32.start.end [1/1] (short) (narrow) %v879_v19, 16 }
 0x526   :  { %v850_v30 = vpop.f32.mrf.mxu3 }
 0x527   :  { %946 = vxpose.xlu0.b32.start.end [1/1] (short) (narrow) %v850_v30, 16 }
 0x52e   :  { %v821_v31 = vpop.f32.mrf.mxu2 }
 0x52f   :  { %914 = vxpose.xlu2.b32.start.end [1/1] (short) (narrow) %v821_v31, 16 }
 0x560   :  { %v898_v33 = vpop.trf.xlu0 }
 0x561   :  { %v1013_v47 = vrot.slane %v898_v33, 4 }
 0x568   :  { %v899_v35 = vpop.trf.xlu0 }
 0x569   :  { %v1069_v9 = vrot.slane %v899_v35, 4 }
 0x5a6   :  { %v994_v32 = vpop.trf.xlu2 }
 0x5a7   :  { %v1023_v38 = vrot.slane %v994_v32, 4 }
 0x5ae   :  { %v995_v34 = vpop.trf.xlu2 }
 0x5af   :  { %v1079_v61 = vrot.slane %v995_v34, 4 }
 0x5c8   :  { %v930_v41 = vpop.trf.xlu2 }
 0x5c9   :  { %v1024_v43 = vsel %vm1011_vm10, %v1023_v38, %v930_v41  ;;  %v1025_v44 = vrot.slane %v930_v41, 4 }
 0x5ca   :  { %v1030_v49 = vperm.slane %v1024_v43, %v3492_v39 }
 0x5cb   :  { %v1026_v48 = vsel %vm1011_vm10, %v994_v32, %v1025_v44  ;;  %v962_v50 = vpop.trf.xlu0 }
 0x5cc   :  { %v1034_v51 = vperm.slane %v1026_v48, %v3492_v39  ;;  %v1010_v52 = vrot.slane %v962_v50, 4  ;;  %v1014_v53 = vsel %vm1011_vm10, %v962_v50, %v1013_v47  ;;  %v1035_v58 = vrot.slane %v1030_v49, 4 }
 0x5cd   :  { %v1022_v55 = vperm.slane %v1014_v53, %v3492_v39 }
 0x5ce   :  { %v1047_v56 = vrot.slane %v1034_v51, 4  ;;  %v1012_v57 = vsel %vm1011_vm10, %v1010_v52, %v898_v33 }
 0x5cf   :  { %v1018_v59 = vperm.slane %v1012_v57, %v3492_v39  ;;  %v1049_v60 = vrot.slane %v1022_v55, 4 }
 0x5d0   :  { %v1048_v62 = vsel %vm1011_vm10, %v1047_v56, %v1022_v55  ;;  %v931_v63 = vpop.trf.xlu2 }
 0x5d1   :  { %v1036_v0 = vsel %vm1011_vm10, %v1035_v58, %v1018_v59  ;;  %v1037_v1 = vrot.slane %v1018_v59, 4  ;;  %v1050_v2 = vsel %vm1011_vm10, %v1034_v51, %v1049_v60  ;;  %v1054_v4 = vperm.slane %v1048_v62, %v3499_v54 }
 0x5d2   :  { %v1042_v5 = vperm.slane %v1036_v0, %v3499_v54  ;;  %v1058_v7 = vperm.slane %v1050_v2, %v3499_v54  ;;  %v1080_v8 = vsel %vm1011_vm10, %v1079_v61, %v931_v63  ;;  %v1081_v40 = vrot.slane %v931_v63, 4 }
 0x5d3   :  { %v1038_v42 = vsel %vm1011_vm10, %v1030_v49, %v1037_v1  ;;  %v1063_v10 = vrot.slane %v1054_v4, 4  ;;  %v1086_v11 = vperm.slane %v1080_v8, %v3492_v39  ;;  %v963_v12 = vpop.trf.xlu0 }
 0x5d4   :  { %v1046_v13 = vperm.slane %v1038_v42, %v3499_v54  ;;  %v1059_v15 = vrot.slane %v1042_v5, 4  ;;  %v1065_v16 = vrot.slane %v1058_v7, 4  ;;  %v1082_v18 = vsel %vm1011_vm10, %v995_v34, %v1081_v40 }
 0x5d5   :  { %v1064_v21 = vsel %vm1011_vm10, 0.0, %v1063_v10  ;;  %v1090_v20 = vperm.slane %v1082_v18, %v3492_v39  ;;  %v1091_v22 = vrot.slane %v1086_v11, 4  ;;  %v1067_v23 = vrot.slane %v963_v12, 4 }
 0x5d6   :  { %v1061_v24 = vrot.slane %v1046_v13, 4  ;;  %v1066_v25 = vsel %vm1011_vm10, 0.0, %v1065_v16  ;;  %v1134_v26 = vsel %vm1011_vm10, %v1065_v16, %v1054_v4  ;;  %v1070_v27 = vsel %vm1011_vm10, %v963_v12, %v1069_v9 }
 0x5d7   :  { %v1138_v17 = vperm.slane %v1134_v26, %v3492_v39  ;;  %v1139_v28 = vrot.slane %v1066_v25, 4  ;;  %v1103_v29 = vrot.slane %v1090_v20, 4  ;;  %v1068_v19 = vsel %vm1011_vm10, %v1067_v23, %v899_v35 }
 0x5d8   :  { %v1062_v30 = vsel %vm1011_vm10, 0.0, %v1061_v24  ;;  %v1074_v31 = vperm.slane %v1068_v19, %v3492_v39  ;;  %v1078_v32 = vperm.slane %v1070_v27, %v3492_v39  ;;  %v1060_v33 = vsel %vm1011_vm10, 0.0, %v1059_v15 }
 0x5d9   :  { %v1140_v34 = vsel %vm1011_vm10, %v1139_v28, %v1064_v21  ;;  %v1123_v36 = vsel %vm1011_vm10, %v1061_v24, %v1042_v5  ;;  %v1128_v37 = vrot.slane %v1062_v30, 4  ;;  %v1159_v38 = vrot.slane %v1138_v17, 4 }
 0x5da   :  { %v1092_v41 = vsel %vm1011_vm10, %v1091_v22, %v1074_v31  ;;  %v1093_v43 = vrot.slane %v1074_v31, 4  ;;  %v1104_v44 = vsel %vm1011_vm10, %v1103_v29, %v1078_v32  ;;  %v1105_v35 = vrot.slane %v1078_v32, 4 }
 0x5db   :  { %v1098_v45 = vperm.slane %v1092_v41, %v3499_v54  ;;  %v1110_v46 = vperm.slane %v1104_v44, %v3499_v54  ;;  %v1127_v47 = vperm.slane %v1123_v36, %v3492_v39  ;;  %v1129_v48 = vsel %vm1011_vm10, %v1128_v37, %v1060_v33 }
 0x5dc   :  { %v1094_v49 = vsel %vm1011_vm10, %v1086_v11, %v1093_v43  ;;  %v1106_v50 = vsel %vm1011_vm10, %v1090_v20, %v1105_v35  ;;  %v1133_v51 = vperm.slane %v1129_v48, %v3492_v39  ;;  %v1144_v52 = vperm.slane %v1140_v34, %v3492_v39 }
 0x5dd   :  { %v1102_v53 = vperm.slane %v1094_v49, %v3499_v54  ;;  %v1114_v55 = vperm.slane %v1106_v50, %v3499_v54  ;;  %v1115_v56 = vrot.slane %v1098_v45, 4  ;;  %v1147_v57 = vrot.slane %v1127_v47, 4 }
 0x5de   :  { %v1160_v58 = vsel %vm1011_vm10, %v1144_v52, %v1159_v38  ;;  %v1145_v59 = vrot.slane %v1133_v51, 4  ;;  %v1157_v60 = vrot.slane %v1144_v52, 4  ;;  %v1119_v63 = vrot.slane %v1110_v46, 4 }
 0x5df   :  { %v1116_v61 = vsel %vm1011_vm10, 0.0, %v1115_v56  ;;  %v1117_v62 = vrot.slane %v1102_v53, 4  ;;  %v1121_v0 = vrot.slane %v1114_v55, 4  ;;  %v1148_v1 = vsel %vm1011_vm10, %v1133_v51, %v1147_v57  ;;  %v2914_v53 = vld [vmem:[%s4037_s2 + $0x78] sm:$0xff]  ;;  %v2913_v55 = vld [vmem:[%s4037_s2 + $0x70] sm:$0xff]  ;;  %v2912_v56 = vld [vmem:[%s4037_s2 + $0x68] sm:$0xff] }
 0x5e0   :  { %v1168_v2 = vperm.slane %v1160_v58, %v3499_v54  ;;  %v1146_v4 = vsel %vm1011_vm10, %v1145_v59, %v1127_v47  ;;  %v1158_v5 = vsel %vm1011_vm10, %v1157_v60, %v1138_v17  ;;  %v1156_v40 = vperm.slane %v1148_v1, %v3499_v54  ;;  %1286 = vmatpush.msra.mxu1 %v2914_v53  ;;  %v2911_v57 = vld [vmem:[%s4037_s2 + $0x60] sm:$0xff] }
 0x5e1   :  { %v1118_v7 = vsel %vm1011_vm10, 0.0, %v1117_v62  ;;  %v1122_v8 = vsel %vm1011_vm10, 0.0, %v1121_v0  ;;  %v1152_v9 = vperm.slane %v1146_v4, %v3499_v54  ;;  %v1164_v12 = vperm.slane %v1158_v5, %v3499_v54 }
 0x5e2   :  { %v1182_v42 = vrot.slane %v1118_v7, 4  ;;  %v1193_v10 = vrot.slane %v1122_v8, 4  ;;  %v1173_v11 = vrot.slane %v1168_v2, 4  ;;  %v1120_v13 = vsel %vm1011_vm10, 0.0, %v1119_v63  ;;  %1287 = vmatpush.msra.mxu1 %v2913_v55  ;;  %v3054_v8 = vld [vmem:[#allocation7 + $0x5] ss:$0 sm:$0xff] }
 0x5e3   :  { %v1175_v15 = vrot.slane %v1156_v40, 4  ;;  %v1171_v16 = vrot.slane %v1152_v9, 4  ;;  %v1188_v18 = vsel %vm1011_vm10, %v1121_v0, %v1110_v46  ;;  %v1169_v20 = vrot.slane %v1164_v12, 4 }
 0x5e4   :  { %v1174_v21 = vsel %vm1011_vm10, %v1173_v11, %v1156_v40  ;;  %v1177_v22 = vsel %vm1011_vm10, %v1117_v62, %v1098_v45  ;;  %v1183_v23 = vsel %vm1011_vm10, %v1182_v42, %v1116_v61  ;;  %v1192_v27 = vperm.slane %v1188_v18, %v3492_v39  ;;  %1288 = vmatpush.msra.mxu1 %v2912_v56 }
 0x5e5   :  { %1241 = vrot.lane.b32.xlu1 %v1174_v21, %s3282_s18  ;;  %v1176_v24 = vsel %vm1011_vm10, %v1168_v2, %v1175_v15  ;;  %v1172_v25 = vsel %vm1011_vm10, %v1164_v12, %v1171_v16  ;;  %v1187_v26 = vperm.slane %v1183_v23, %v3492_v39  ;;  %v1194_v17 = vsel %vm1011_vm10, %v1193_v10, %v1120_v13 }
 0x5e6   :  { %1249 = vrot.lane.b32.xlu2 %v1176_v24, %s3283_s19  ;;  %1233 = vrot.lane.b32.xlu0 %v1172_v25, %s3273_s10  ;;  %v1170_v28 = vsel %vm1011_vm10, %v1169_v20, %v1152_v9  ;;  %v1181_v29 = vperm.slane %v1177_v22, %v3492_v39  ;;  %v1198_v19 = vperm.slane %v1194_v17, %v3492_v39  ;;  %v1213_v31 = vrot.slane %v1192_v27, 4  ;;  %v1350_v17 = vld [vmem:[%s4038_s3 + $0x8] sm:$0xff] }
 0x5e7   :  { %v1199_v30 = vrot.slane %v1187_v26, 4  ;;  %1289 = vmatpush.msra.mxu1 %v2911_v57 }
 0x5e8   :  { %v1211_v33 = vrot.slane %v1198_v19, 4  ;;  %v1201_v37 = vrot.slane %v1181_v29, 4  ;;  %v1214_v38 = vsel %vm1011_vm10, %v1198_v19, %v1213_v31  ;;  %v1349_v19 = vld [vmem:[%s4038_s3] sm:$0xff] }
 0x5e9   :  { %v1200_v32 = vsel %vm1011_vm10, %v1199_v30, %v1181_v29  ;;  %v1222_v45 = vperm.slane %v1214_v38, %v3499_v54  ;;  %v1419_v38 = vld [vmem:[%s4040_s5 + $0x78] sm:$0xff] }
 0x5ea   :  { %v1206_v34 = vperm.slane %v1200_v32, %v3499_v54  ;;  %v1212_v36 = vsel %vm1011_vm10, %v1211_v33, %v1192_v27  ;;  %v1202_v46 = vsel %vm1011_vm10, %v1187_v26, %v1201_v37  ;;  %v1352_v26 = vld [vmem:[%s4038_s3 + $0x18] sm:$0xff]  ;;  %v1351_v27 = vld [vmem:[%s4038_s3 + $0x10] sm:$0xff]  ;;  %1421 = vmatpush.msra.mxu3 %v1419_v38 }
 0x5eb   :  { %v1218_v41 = vperm.slane %v1212_v36, %v3499_v54  ;;  %v1210_v48 = vperm.slane %v1202_v46, %v3499_v54  ;;  %v1227_v49 = vrot.slane %v1222_v45, 4  ;;  %1375 = vmatpush.msra.mxu2 %v1352_v26 }
 0x5ec   :  { %v1225_v43 = vrot.slane %v1206_v34, 4 }
 0x5ed   :  { %v1223_v44 = vrot.slane %v1218_v41, 4  ;;  %v1228_v50 = vsel %vm1011_vm10, %v1227_v49, %v1210_v48  ;;  %v1229_v51 = vrot.slane %v1210_v48, 4  ;;  %1376 = vmatpush.msra.mxu2 %v1351_v27  ;;  %v1416_v49 = vld [vmem:[%s4040_s5 + $0x60] sm:$0xff] }
 0x5ee   :  { %v1226_v35 = vsel %vm1011_vm10, %v1218_v41, %v1225_v43  ;;  %v1418_v41 = vld [vmem:[%s4040_s5 + $0x70] sm:$0xff] }
 0x5ef   :  { %1235 = vrot.lane.b32.xlu1 %v1226_v35, %s3273_s10  ;;  %v1224_v47 = vsel %vm1011_vm10, %v1223_v44, %v1206_v34  ;;  %v1230_v52 = vsel %vm1011_vm10, %v1222_v45, %v1229_v51  ;;  %1377 = vmatpush.msra.mxu2 %v1350_v17  ;;  %v3055_v43 = vld [vmem:[#allocation7 + $0x6] ss:$0 sm:$0xff]  ;;  %v1417_v35 = vld [vmem:[%s4040_s5 + $0x68] sm:$0xff] }
 0x5f0   :  { %1422 = vmatpush.msra.mxu3 %v1418_v41 }
 0x5f1   :  { %1378 = vmatpush.msra.mxu2 %v1349_v19 }
 0x5f2   :  { %1423 = vmatpush.msra.mxu3 %v1417_v35 }
 0x5f4   :  { %1424 = vmatpush.msra.mxu3 %v1416_v49  ;;  %v3166_v49 = vld [vmem:[#allocation2 + $0x18] sm:$0xff] }
 0x5f7   :  { %1243 = vrot.lane.b32.xlu1 %v1228_v50, %s3282_s18 }
 0x5ff   :  { %1251 = vrot.lane.b32.xlu1 %v1230_v52, %s3283_s19 }
 0x640   :  { %v1250_v61 = vpop.permute.xlu2 %1249 }
 0x657   :  { %v1242_v59 = vpop.permute.xlu1 %1241 }
 0x658   :  { %v1234_v58 = vpop.permute.xlu0 %1233 }
 0x659   :  { %v1255_v60 = vsel %vm424_vm8, %v1170_v28, %v1234_v58 }
 0x65a   :  { %v1257_v62 = vsel %vm549_vm9, %v1255_v60, %v1242_v59 }
 0x65b   :  { %v1260_v63 = vsel %vm1259_vm11, %v1257_v62, %v1250_v61 }
 0x65c   :  { %2915 = vmatmul.msk.f32.vlgmr.msra.gmra.mxu1 %vm92_vm0, %v1260_v63 }
 0x661   :  { %v1236_v0 = vpop.permute.xlu1 %1235 }
 0x662   :  { %v1256_v2 = vsel %vm424_vm8, %v1224_v47, %v1236_v0  ;;  %v3056_v47 = vld [vmem:[#allocation7 + $0x7] ss:$0 sm:$0xff]  ;;  %v1415_v0 = vld [vmem:[%s4040_s5 + $0x58] sm:$0xff] }
 0x663   :  { %1425 = vmatpush.msra.mxu3 %v1415_v0  ;;  %v2921_v0 = vld [vmem:[%s4037_s2 + $0x90] sm:$0xff] }
 0x669   :  { %v1244_v1 = vpop.permute.xlu1 %1243 }
 0x66a   :  { %v1258_v4 = vsel %vm549_vm9, %v1256_v2, %v1244_v1  ;;  %v1414_v1 = vld [vmem:[%s4040_s5 + $0x50] sm:$0xff]  ;;  %v1413_v2 = vld [vmem:[%s4040_s5 + $0x48] sm:$0xff] }
 0x66b   :  { %1426 = vmatpush.msra.mxu3 %v1414_v1  ;;  %v2927_v1 = vld [vmem:[%s4037_s2 + $0xb0] sm:$0xff] }
 0x66d   :  { %1427 = vmatpush.msra.mxu3 %v1413_v2  ;;  %v2933_v2 = vld [vmem:[%s4037_s2 + $0xd0] sm:$0xff] }
 0x671   :  { %v1252_v5 = vpop.permute.xlu1 %1251 }
 0x672   :  { %v1261_v7 = vsel %vm1259_vm11, %v1258_v4, %v1252_v5  ;;  %v1412_v4 = vld [vmem:[%s4040_s5 + $0x40] sm:$0xff]  ;;  %v1411_v5 = vld [vmem:[%s4040_s5 + $0x38] sm:$0xff] }
 0x673   :  { %2916 = vmatmul.msk.f32.gmra.mxu1 %vm92_vm0, %v1261_v7  ;;  %1428 = vmatpush.msra.mxu3 %v1412_v4  ;;  %v1410_v7 = vld [vmem:[%s4040_s5 + $0x30] sm:$0xff]  ;;  %v2920_v4 = vld [vmem:[%s4037_s2 + $0x88] sm:$0xff] }
 0x675   :  { %1429 = vmatpush.msra.mxu3 %v1411_v5  ;;  %v2926_v5 = vld [vmem:[%s4037_s2 + $0xa8] sm:$0xff] }
 0x677   :  { %1430 = vmatpush.msra.mxu3 %v1410_v7  ;;  %v2932_v7 = vld [vmem:[%s4037_s2 + $0xc8] sm:$0xff] }
 0x6d9   :  { %v1291_v40 = vpop.f32.mrf.mxu1 }
 0x6da   :  { %v1292_v9 = vadd.f32 %v3054_v8, %v1291_v40  ;;  %v1408_v40 = vld [vmem:[%s4040_s5 + $0x20] sm:$0xff] }
 0x6dc   :  { %v3603_v42 = vadd.f32 %v1292_v9, %v3343_v3  ;;  %v1407_v9 = vld [vmem:[%s4040_s5 + $0x18] sm:$0xff] }
 0x6de   :  { %v1299_v10 = vsel %vm92_vm0, %v3603_v42, 0.0 }
 0x6df   :  { %1300 = vadd.xlane.f32.xlu0 %v1299_v10  ;;  %v1406_v10 = vld [vmem:[%s4040_s5 + $0x10] sm:$0xff] }
 0x6f0   :  { %v1294_v11 = vpop.f32.mrf.mxu1 }
 0x6f1   :  { %v1295_v12 = vadd.f32 %v3054_v8, %v1294_v11  ;;  %v1409_v8 = vld [vmem:[%s4040_s5 + $0x28] sm:$0xff] }
 0x6f2   :  { %1431 = vmatpush.msra.mxu3 %v1409_v8  ;;  %v1405_v11 = vld [vmem:[%s4040_s5 + $0x8] sm:$0xff] }
 0x6f3   :  { %v3608_v13 = vadd.f32 %v1295_v12, %v3347_v6  ;;  %v1404_v12 = vld [vmem:[%s4040_s5] sm:$0xff] }
 0x6f4   :  { %1432 = vmatpush.msra.mxu3 %v1408_v40 }
 0x6f5   :  { %v1302_v15 = vsel %vm92_vm0, %v3608_v13, 0.0 }
 0x6f6   :  { %1303 = vadd.xlane.f32.xlu1 %v1302_v15  ;;  %1433 = vmatpush.msra.mxu3 %v1407_v9  ;;  %v3057_v15 = vld [vmem:[%s4039_s4] ss:$0 sm:$0xff] }
 0x6f7   :  { %v2919_v9 = vld [vmem:[%s4037_s2 + $0x80] sm:$0xff] }
 0x6f8   :  { %1434 = vmatpush.msra.mxu3 %v1406_v10  ;;  %v2925_v10 = vld [vmem:[%s4037_s2 + $0xa0] sm:$0xff] }
 0x6fa   :  { %1435 = vmatpush.msra.mxu3 %v1405_v11  ;;  %v2931_v11 = vld [vmem:[%s4037_s2 + $0xc0] sm:$0xff] }
 0x6fc   :  { %1436 = vmatpush.msra.mxu3 %v1404_v12 }
 0x752   :  { %v1301_v16 = vpop.xlane.xlu0 %1300 }
 0x753   :  { %v1305_v18 = vmul.f32 %v1301_v16, %v3351_v14 }
 0x755   :  { %v1307_v21 = vsub.f32 %v3603_v42, %v1305_v18 }
 0x757   :  { %v1309_v3 = vmul.f32 %v1307_v21, %v1307_v21 }
 0x759   :  { %v1311_v20 = vsel %vm92_vm0, %v1309_v3, 0.0 }
 0x75a   :  { %1312 = vadd.xlane.f32.xlu2 %v1311_v20 }
 0x769   :  { %v1304_v22 = vpop.xlane.xlu1 %1303 }
 0x76a   :  { %v1306_v23 = vmul.f32 %v1304_v22, %v3351_v14 }
 0x76c   :  { %v1308_v24 = vsub.f32 %v3608_v13, %v1306_v23 }
 0x76e   :  { %v1310_v6 = vmul.f32 %v1308_v24, %v1308_v24 }
 0x770   :  { %v1314_v25 = vsel %vm92_vm0, %v1310_v6, 0.0 }
 0x771   :  { %1315 = vadd.xlane.f32.xlu0 %v1314_v25 }
 0x7cd   :  { %v1313_v28 = vpop.xlane.xlu2 %1312 }
 0x7ce   :  { %v1317_v29 = vmul.f32 %v1313_v28, %v3351_v14 }
 0x7d0   :  { %v1319_v30 = vadd.f32 1e-05, %v1317_v29 }
 0x7d2   :  { %3109 = vrsqrt.f32 %v1319_v30  ;;  %vm1327_vm13 = vweird.f32 %v1319_v30 }
 0x7d8   :  { %v3110_v31 = vpop.eup %3109 }
 0x7d9   :  { %v1322_v32 = vmul.f32 %v3110_v31, %v1319_v30  ;;  %vm1328_vm12 = vweird.f32 %v3110_v31 }
 0x7da   :  { %vm1329_vm14 = vmor %vm1327_vm13, %vm1328_vm12 }
 0x7db   :  { %v1323_v33 = vmul.f32 %v3110_v31, %v1322_v32 }
 0x7dd   :  { %v1324_v34 = vmul.f32 0.5, %v1323_v33 }
 0x7df   :  { %v1325_v36 = vsub.f32 1.5, %v1324_v34 }
 0x7e1   :  { %v1326_v37 = vmul.f32 %v3110_v31, %v1325_v36 }
 0x7e3   :  { %v1330_v44 = vsel %vm1329_vm14, %v3110_v31, %v1326_v37  ;;  %v3058_v37 = vld [vmem:[#allocation7 + $0x8] ss:$0 sm:$0xff] }
 0x7e4   :  { %v1341_v45 = vmul.f32 %v1330_v44, %v1307_v21  ;;  %v1316_v46 = vpop.xlane.xlu0 %1315  ;;  %v3165_v44 = vld [vmem:[#allocation2 + $0x10] sm:$0xff] }
 0x7e5   :  { %v1318_v48 = vmul.f32 %v1316_v46, %v3351_v14 }
 0x7e6   :  { %v1344_v50 = vmul.f32 %v3055_v43, %v1341_v45 }
 0x7e7   :  { %v1320_v51 = vadd.f32 1e-05, %v1318_v48 }
 0x7e8   :  { %v1347_v52 = vadd.f32 %v3056_v47, %v1344_v50 }
 0x7e9   :  { %3111 = vrsqrt.f32 %v1320_v51  ;;  %vm1337_vm1 = vweird.f32 %v1320_v51 }
 0x7ea   :  { %2917 = vmatmul.msk.f32.vlgmr.msra.gmra.mxu2 %vm92_vm0, %v1347_v52 }
 0x7ef   :  { %v3112_v53 = vpop.eup %3111 }
 0x7f0   :  { %v1332_v55 = vmul.f32 %v3112_v53, %v1320_v51  ;;  %vm1338_vm15 = vweird.f32 %v3112_v53 }
 0x7f1   :  { %vm1339_vm2 = vmor %vm1337_vm1, %vm1338_vm15 }
 0x7f2   :  { %v1333_v56 = vmul.f32 %v3112_v53, %v1332_v55 }
 0x7f4   :  { %v1334_v57 = vmul.f32 0.5, %v1333_v56 }
 0x7f6   :  { %v1335_v58 = vsub.f32 1.5, %v1334_v57 }
 0x7f8   :  { %v1336_v59 = vmul.f32 %v3112_v53, %v1335_v58 }
 0x7fa   :  { %v1340_v60 = vsel %vm1339_vm2, %v3112_v53, %v1336_v59 }
 0x7fb   :  { %v1342_v61 = vmul.f32 %v1340_v60, %v1308_v24 }
 0x7fd   :  { %v1345_v62 = vmul.f32 %v3055_v43, %v1342_v61  ;;  %v2922_v61 = vld [vmem:[%s4037_s2 + $0x98] sm:$0xff] }
 0x7fe   :  { %1531 = vmatpush.msrb.mxu0 %v2922_v61 }
 0x7ff   :  { %v1348_v63 = vadd.f32 %v3056_v47, %v1345_v62  ;;  %v2928_v62 = vld [vmem:[%s4037_s2 + $0xb8] sm:$0xff] }
 0x800   :  { %1560 = vmatpush.msrb.mxu1 %v2928_v62  ;;  %1532 = vmatpush.msrb.mxu0 %v2921_v0 }
 0x801   :  { %2918 = vmatmul.msk.f32.gmra.mxu2 %vm92_vm0, %v1348_v63  ;;  %v2934_v63 = vld [vmem:[%s4037_s2 + $0xd8] sm:$0xff] }
 0x802   :  { %1589 = vmatpush.msrb.mxu2 %v2934_v63  ;;  %1561 = vmatpush.msrb.mxu1 %v2927_v1 }
 0x803   :  { %1533 = vmatpush.msrb.mxu0 %v2920_v4 }
 0x804   :  { %1590 = vmatpush.msrb.mxu2 %v2933_v2  ;;  %1562 = vmatpush.msrb.mxu1 %v2926_v5 }
 0x805   :  { %1534 = vmatpush.msrb.mxu0 %v2919_v9 }
 0x806   :  { %1591 = vmatpush.msrb.mxu2 %v2932_v7  ;;  %1563 = vmatpush.msrb.mxu1 %v2925_v10 }
 0x808   :  { %1592 = vmatpush.msrb.mxu2 %v2931_v11 }
 0x86d   :  { %v1380_v16 = vpop.f32.mrf.mxu2 }
 0x86e   :  { %v1381_v18 = vadd.f32 %v3057_v15, %v1380_v16 }
 0x870   :  { %v1388_v21 = vmul.f32 0.044715, %v1381_v18  ;;  %v1386_v6 = vmul.f32 0.5, %v1381_v18 }
 0x872   :  { %v1390_v3 = vmul.f32 %v1388_v21, %v1381_v18 }
 0x874   :  { %v1392_v20 = vmul.f32 %v1390_v3, %v1381_v18 }
 0x876   :  { %v1394_v22 = vadd.f32 %v1392_v20, %v1381_v18 }
 0x878   :  { %v1396_v23 = vmul.f32 0.7978846, %v1394_v22  ;;  %v3059_v22 = vld [vmem:[#allocation7 + $0x9] ss:$0 sm:$0xff] }
 0x87a   :  { %3113 = vtanh.f32 %v1396_v23 }
 0x880   :  { %v3114_v24 = vpop.eup %3113 }
 0x881   :  { %v1400_v25 = vadd.f32 1.0, %v3114_v24 }
 0x883   :  { %v1402_v26 = vmul.f32 %v1400_v25, %v1386_v6  ;;  %v3060_v25 = vld [vmem:[#allocation7 + $0xa] ss:$0 sm:$0xff] }
 0x884   :  { %v1383_v27 = vpop.f32.mrf.mxu2 }
 0x885   :  { %v1384_v17 = vadd.f32 %v3057_v15, %v1383_v27  ;;  %1437 = vmatmul.f32.vlgmr.msra.gmra.mxu3 %v1402_v26 }
 0x887   :  { %v1389_v28 = vmul.f32 0.044715, %v1384_v17  ;;  %v1387_v33 = vmul.f32 0.5, %v1384_v17 }
 0x889   :  { %v1391_v29 = vmul.f32 %v1389_v28, %v1384_v17 }
 0x88b   :  { %v1393_v19 = vmul.f32 %v1391_v29, %v1384_v17 }
 0x88d   :  { %v1395_v30 = vadd.f32 %v1393_v19, %v1384_v17 }
 0x88f   :  { %v1397_v31 = vmul.f32 0.7978846, %v1395_v30 }
 0x891   :  { %3115 = vtanh.f32 %v1397_v31 }
 0x897   :  { %v3116_v32 = vpop.eup %3115 }
 0x898   :  { %v1401_v34 = vadd.f32 1.0, %v3116_v32 }
 0x89a   :  { %v1403_v36 = vmul.f32 %v1401_v34, %v1387_v33 }
 0x89c   :  { %1440 = vmatmul.f32.gmra.mxu3 %v1403_v36 }
 0x908   :  { %v1438_v38 = vpop.f32.mrf.mxu3 }
 0x909   :  { %v1439_v41 = vadd.f32 %v3058_v37, %v1438_v38 }
 0x90b   :  { %v1444_v43 = vadd.f32 %v1439_v41, %v3603_v42  ;;  %v3061_v41 = vld [vmem:[#allocation7 + $0xb] ss:$0 sm:$0xff] }
 0x90d   :  { %v3686_v35 = vadd.f32 %v3165_v44, %v1444_v43 }
 0x90f   :  { %v1457_v45 = vsel %vm92_vm0, %v3686_v35, 0.0 }
 0x910   :  { %1458 = vadd.xlane.f32.xlu1 %v1457_v45  ;;  %v3063_v45 = vld [vmem:[#allocation7 + $0xd] ss:$0 sm:$0xff] }
 0x91f   :  { %v1441_v46 = vpop.f32.mrf.mxu3 }
 0x920   :  { %v1442_v47 = vadd.f32 %v3058_v37, %v1441_v46 }
 0x922   :  { %v1445_v48 = vadd.f32 %v1442_v47, %v3608_v13 }
 0x924   :  { %v3691_v50 = vadd.f32 %v3166_v49, %v1445_v48  ;;  %v3062_v49 = vld [vmem:[#allocation7 + $0xc] ss:$0 sm:$0xff] }
 0x926   :  { %v1460_v51 = vsel %vm92_vm0, %v3691_v50, 0.0 }
 0x927   :  { %1461 = vadd.xlane.f32.xlu0 %v1460_v51 }
 0x983   :  { %v1459_v52 = vpop.xlane.xlu1 %1458 }
 0x984   :  { %v1463_v42 = vmul.f32 %v1459_v52, %v3351_v14 }
 0x986   :  { %v1465_v53 = vsub.f32 %v3686_v35, %v1463_v42 }
 0x988   :  { %v1467_v55 = vmul.f32 %v1465_v53, %v1465_v53 }
 0x98a   :  { %v1469_v56 = vsel %vm92_vm0, %v1467_v55, 0.0 }
 0x98b   :  { %1470 = vadd.xlane.f32.xlu2 %v1469_v56 }
 0x99a   :  { %v1462_v57 = vpop.xlane.xlu0 %1461 }
 0x99b   :  { %v1464_v58 = vmul.f32 %v1462_v57, %v3351_v14 }
 0x99d   :  { %v3700_v13 = vsub.f32 %v3691_v50, %v1464_v58 }
 0x99f   :  { %v1468_v59 = vmul.f32 %v3700_v13, %v3700_v13 }
 0x9a1   :  { %v1472_v60 = vsel %vm92_vm0, %v1468_v59, 0.0 }
 0x9a2   :  { %1473 = vadd.xlane.f32.xlu1 %v1472_v60 }
 0x9fe   :  { %v1471_v8 = vpop.xlane.xlu2 %1470 }
 0x9ff   :  { %v1475_v40 = vmul.f32 %v1471_v8, %v3351_v14 }
 0xa01   :  { %v1477_v12 = vadd.f32 1e-05, %v1475_v40 }
 0xa03   :  { %3117 = vrsqrt.f32 %v1477_v12  ;;  %vm1485_vm4 = vweird.f32 %v1477_v12 }
 0xa09   :  { %v3118_v15 = vpop.eup %3117 }
 0xa0a   :  { %v1480_v16 = vmul.f32 %v3118_v15, %v1477_v12  ;;  %vm1486_vm3 = vweird.f32 %v3118_v15 }
 0xa0b   :  { %vm1487_vm5 = vmor %vm1485_vm4, %vm1486_vm3 }
 0xa0c   :  { %v1481_v18 = vmul.f32 %v3118_v15, %v1480_v16 }
 0xa0e   :  { %v1482_v21 = vmul.f32 0.5, %v1481_v18 }
 0xa10   :  { %v1483_v3 = vsub.f32 1.5, %v1482_v21 }
 0xa12   :  { %v1484_v20 = vmul.f32 %v3118_v15, %v1483_v3 }
 0xa14   :  { %v1488_v23 = vsel %vm1487_vm5, %v3118_v15, %v1484_v20 }
 0xa15   :  { %v1499_v24 = vmul.f32 %v1488_v23, %v1465_v53  ;;  %v1474_v6 = vpop.xlane.xlu1 %1473  ;;  %v3167_v23 = vld [vmem:[#allocation5] sm:$0xff] }
 0xa16   :  { %v1476_v26 = vmul.f32 %v1474_v6, %v3351_v14 }
 0xa17   :  { %v1502_v27 = vmul.f32 %v3059_v22, %v1499_v24 }
 0xa18   :  { %v1478_v17 = vadd.f32 1e-05, %v1476_v26 }
 0xa19   :  { %v1505_v28 = vadd.f32 %v3060_v25, %v1502_v27 }
 0xa1a   :  { %3119 = vrsqrt.f32 %v1478_v17  ;;  %vm1495_vm7 = vweird.f32 %v1478_v17 }
 0xa1b   :  { %2923 = vmatmul.msk.f32.vlgmr.msrb.gmra.mxu0 %vm92_vm0, %v1505_v28  ;;  %2929 = vmatmul.msk.f32.vlgmr.msrb.gmra.mxu1 %vm92_vm0, %v1505_v28 }
 0xa1c   :  { %2935 = vmatmul.msk.f32.vlgmr.msrb.gmra.mxu2 %vm92_vm0, %v1505_v28 }
 0xa20   :  { %v3120_v29 = vpop.eup %3119 }
 0xa21   :  { %v1490_v19 = vmul.f32 %v3120_v29, %v1478_v17  ;;  %vm1496_vm6 = vweird.f32 %v3120_v29 }
 0xa22   :  { %vm1497_vm12 = vmor %vm1495_vm7, %vm1496_vm6 }
 0xa23   :  { %v1491_v30 = vmul.f32 %v3120_v29, %v1490_v19 }
 0xa25   :  { %v1492_v31 = vmul.f32 0.5, %v1491_v30 }
 0xa27   :  { %v1493_v32 = vsub.f32 1.5, %v1492_v31 }
 0xa29   :  { %v1494_v33 = vmul.f32 %v3120_v29, %v1493_v32 }
 0xa2b   :  { %v1498_v34 = vsel %vm1497_vm12, %v3120_v29, %v1494_v33  ;;  %v3168_v29 = vld [vmem:[#allocation5 + $0x8] sm:$0xff] }
 0xa2c   :  { %v1500_v36 = vmul.f32 %v1498_v34, %v3700_v13 }
 0xa2e   :  { %v1503_v37 = vmul.f32 %v3059_v22, %v1500_v36 }
 0xa30   :  { %v1506_v38 = vadd.f32 %v3060_v25, %v1503_v37 }
 0xa32   :  { %2924 = vmatmul.msk.f32.gmra.mxu0 %vm92_vm0, %v1506_v38  ;;  %2930 = vmatmul.msk.f32.gmra.mxu1 %vm92_vm0, %v1506_v38 }
 0xa33   :  { %2936 = vmatmul.msk.f32.gmra.mxu2 %vm92_vm0, %v1506_v38 }
 0xa98   :  { %v1536_v43 = vpop.f32.mrf.mxu0  ;;  %v1565_v48 = vpop.f32.mrf.mxu1 }
 0xa99   :  { %v1537_v44 = vadd.f32 %v3061_v41, %v1536_v43  ;;  %v1566_v52 = vadd.f32 %v3062_v49, %v1565_v48 }
 0xa9b   :  { %1602 = vrot.lane.b32.xlu2 %v1537_v44, %s3279_s17  ;;  %1606 = vrot.lane.b32.xlu0 %v1537_v44, %s3278_s16 }
 0xa9f   :  { %v1594_v46 = vpop.f32.mrf.mxu2 }
 0xaa0   :  { %v3752_v47 = vadd.f32 %v3063_v45, %v1594_v46 }
 0xaa3   :  { %1610 = vrot.lane.b32.xlu0 %v1537_v44, %s3277_s6 }
 0xaaf   :  { %v1568_v51 = vpop.f32.mrf.mxu1  ;;  %v1539_v55 = vpop.f32.mrf.mxu0 }
 0xab0   :  { %v1569_v42 = vadd.f32 %v3062_v49, %v1568_v51  ;;  %v1540_v56 = vadd.f32 %v3061_v41, %v1539_v55 }
 0xab2   :  { %v3035_v53 = vpack.i.bf16 %v1569_v42, %v1566_v52 }
 0xab4   :  { %3036 = vrot.lane.b32.xlu1 %v3035_v53, %s3279_s17  ;;  %3031 = vrot.lane.b32.xlu2 %v3035_v53, %s3277_s6 }
 0xab5   :  { %3026 = vrot.lane.b32.xlu0 %v3035_v53, %s3278_s16 }
 0xab6   :  { %v1597_v57 = vpop.f32.mrf.mxu2 }
 0xab7   :  { %v3760_v58 = vadd.f32 %v3063_v45, %v1597_v57 }
 0xabc   :  { %1608 = vrot.lane.b32.xlu2 %v1540_v56, %s3278_s16 }
 0xabd   :  { %1612 = vrot.lane.b32.xlu0 %v1540_v56, %s3277_s6 }
 0xac4   :  { %1604 = vrot.lane.b32.xlu2 %v1540_v56, %s3279_s17 }
 0xac5   :  { %1644 = vrot.lane.b32.xlu0 %v3760_v58, %s3278_s16 }
 0xaf5   :  { %v1603_v13 = vpop.permute.xlu2 %1602 }
 0xb0d   :  { %v1607_v61 = vpop.permute.xlu0 %1606 }
 0xb0e   :  { %v3032_v59 = vpop.permute.xlu2 %3031 }
 0xb0f   :  { %v3033_v60 = vunpack.i.l.bf16 %v3032_v59  ;;  %v3034_v62 = vunpack.i.h.bf16 %v3032_v59 }
 0xb11   :  { %1750 = vxpose.xlu0.b32.start [1/2] (short) (narrow) %v3033_v60, 8 }
 0xb15   :  { %v1611_v63 = vpop.permute.xlu0 %1610 }
 0xb16   :  { %v1609_v9 = vpop.permute.xlu2 %1608 }
 0xb19   :  { %1751 = vxpose.xlu0.b32.end [2/2] (short) (narrow) %v3034_v62, 8 }
 0xb1e   :  { %v1605_v10 = vpop.permute.xlu2 %1604 }
 0xb26   :  { %v3037_v0 = vpop.permute.xlu1 %3036 }
 0xb27   :  { %v3038_v1 = vunpack.i.l.bf16 %v3037_v0  ;;  %v3027_v2 = vpop.permute.xlu0 %3026  ;;  %v3039_v8 = vunpack.i.h.bf16 %v3037_v0 }
 0xb28   :  { %v3028_v4 = vunpack.i.l.bf16 %v3027_v2  ;;  %v3029_v7 = vunpack.i.h.bf16 %v3027_v2 }
 0xb29   :  { %1686 = vxpose.xlu2.b32.start [1/2] (short) (narrow) %v3038_v1, 8 }
 0xb2a   :  { %v3040_v5 = vpack.i.bf16 %v3028_v4, %v1566_v52  ;;  %v3042_v40 = vpack.i.bf16 %v3029_v7, %v1569_v42 }
 0xb2c   :  { %3041 = vxpose.xlu1.b32.start [1/2] (short) (narrow) %v3040_v5, 8 }
 0xb2f   :  { %v1613_v11 = vpop.permute.xlu0 %1612 }
 0xb31   :  { %1687 = vxpose.xlu2.b32.end [2/2] (short) (narrow) %v3039_v8, 8 }
 0xb34   :  { %3043 = vxpose.xlu1.b32.end [2/2] (short) (narrow) %v3042_v40, 8 }
 0xb37   :  { %v3768_v15 = vpop.permute.xlu0 %1644 }
 0xb8e   :  { %1642 = vrot.lane.b32.xlu1 %v3752_v47, %s3278_s16 }
 0xbb5   :  { %v1766_v3 = vpop.trf.xlu0 }
 0xbc2   :  { %v1702_v12 = vpop.trf.xlu2 }
 0xbc3   :  { %1828 = vmatpush.msra.mxu1 %v1702_v12 }
 0xbc4   :  { %2939 = vmatmul.msk.f32.vlgmr.msra.gmra.mxu1 %vm424_vm8, %v1603_v13 }
 0xbcc   :  { %2940 = vmatmul.msk.f32.gmra.mxu1 %vm424_vm8, %v1605_v10 }
 0xbd0   :  { %v3044_v16 = vpop.trf.xlu1 }
 0xbd1   :  { %v3048_v18 = vunpack.i.h.bf16 %v3044_v16  ;;  %v3045_v21 = vunpack.i.l.bf16 %v3044_v16 }
 0xbd3   :  { %1801 = vmatpush.msra.mxu0 %v3045_v21  ;;  %1855 = vmatpush.msra.mxu2 %v3048_v18 }
 0xbd4   :  { %2937 = vmatmul.msk.f32.vlgmr.msra.gmra.mxu0 %vm424_vm8, %v1537_v44  ;;  %2941 = vmatmul.msk.f32.vlgmr.msra.gmra.mxu2 %vm424_vm8, %v1607_v61 }
 0xbd5   :  { %1882 = vmatpush.msrb.mxu0 %v1766_v3 }
 0xbdc   :  { %2938 = vmatmul.msk.f32.gmra.mxu0 %vm424_vm8, %v1540_v56  ;;  %2942 = vmatmul.msk.f32.gmra.mxu2 %vm424_vm8, %v1609_v9 }
 0xbe4   :  { %2943 = vmatmul.msk.f32.vlgmr.msrb.gmra.mxu0 %vm424_vm8, %v1611_v63 }
 0xbec   :  { %2944 = vmatmul.msk.f32.gmra.mxu0 %vm424_vm8, %v1613_v11 }
 0xc00   :  { %v1643_v13 = vpop.permute.xlu1 %1642 }
 0xc41   :  { %v1830_v34 = vpop.f32.mrf.mxu1 }
 0xc42   :  { %v1892_v44 = vmul.f32 0.35355338, %v1830_v34 }
 0xc44   :  { %v3785_v49 = vadd.f32 %v3167_v23, %v1892_v44 }
 0xc46   :  { %v1912_v53 = vsel %vm549_vm9, %v3785_v49, -inf }
 0xc49   :  { %v1833_v51 = vpop.f32.mrf.mxu1 }
 0xc4a   :  { %v1893_v42 = vmul.f32 0.35355338, %v1833_v51 }
 0xc4c   :  { %v3790_v56 = vadd.f32 %v3168_v29, %v1893_v42 }
 0xc4e   :  { %v1915_v57 = vsel %vm549_vm9, %v3790_v56, -inf }
 0xc51   :  { %v1803_v20 = vpop.f32.mrf.mxu0 }
 0xc52   :  { %v1890_v22 = vmul.f32 0.35355338, %v1803_v20 }
 0xc54   :  { %v1898_v24 = vadd.f32 %v3167_v23, %v1890_v22 }
 0xc56   :  { %v1906_v6 = vsel %vm549_vm9, %v1898_v24, -inf }
 0xc57   :  { %v1857_v25 = vpop.f32.mrf.mxu2  ;;  %1907 = vmax.xlane.f32.xlu1 %v1906_v6 }
 0xc58   :  { %v1894_v26 = vmul.f32 0.35355338, %v1857_v25 }
 0xc59   :  { %v1806_v27 = vpop.f32.mrf.mxu0 }
 0xc5a   :  { %v1891_v17 = vmul.f32 0.35355338, %v1806_v27  ;;  %v3778_v28 = vadd.f32 %v3167_v23, %v1894_v26 }
 0xc5c   :  { %v1899_v19 = vadd.f32 %v3168_v29, %v1891_v17  ;;  %v1918_v30 = vsel %vm549_vm9, %v3778_v28, -inf }
 0xc5e   :  { %v1909_v31 = vsel %vm549_vm9, %v1899_v19, -inf }
 0xc5f   :  { %v1860_v32 = vpop.f32.mrf.mxu2  ;;  %1919 = vmax.xlane.f32.xlu1 %v1918_v30  ;;  %1910 = vmax.xlane.f32.xlu0 %v1909_v31 }
 0xc60   :  { %v1895_v33 = vmul.f32 0.35355338, %v1860_v32 }
 0xc61   :  { %v1884_v36 = vpop.f32.mrf.mxu0 }
 0xc62   :  { %v1896_v37 = vmul.f32 0.35355338, %v1884_v36  ;;  %v1903_v38 = vadd.f32 %v3168_v29, %v1895_v33 }
 0xc64   :  { %v1921_v41 = vsel %vm549_vm9, %v1903_v38, -inf  ;;  %v1904_v43 = vadd.f32 %v3167_v23, %v1896_v37 }
 0xc65   :  { %1922 = vmax.xlane.f32.xlu2 %v1921_v41 }
 0xc66   :  { %v1924_v45 = vsel %vm549_vm9, %v1904_v43, -inf }
 0xc67   :  { %1925 = vmax.xlane.f32.xlu0 %v1924_v45 }
 0xc69   :  { %v1887_v46 = vpop.f32.mrf.mxu0 }
 0xc6a   :  { %v1897_v48 = vmul.f32 0.35355338, %v1887_v46 }
 0xc6c   :  { %v1905_v52 = vadd.f32 %v3168_v29, %v1897_v48 }
 0xc6e   :  { %v1927_v55 = vsel %vm549_vm9, %v1905_v52, -inf }
 0xc6f   :  { %1913 = vmax.xlane.f32.xlu0 %v1912_v53  ;;  %1928 = vmax.xlane.f32.xlu1 %v1927_v55 }
 0xc77   :  { %1916 = vmax.xlane.f32.xlu1 %v1915_v57 }
 0xc83   :  { %1638 = vrot.lane.b32.xlu0 %v3760_v58, %s3279_s17 }
 0xc90   :  { %1636 = vrot.lane.b32.xlu1 %v3752_v47, %s3279_s17 }
 0xcca   :  { %v1908_v59 = vpop.xlane.xlu1 %1907 }
 0xccb   :  { %v1930_v60 = vsub.f32 %v1898_v24, %v1908_v59 }
 0xccd   :  { %v1938_v61 = vmul.f32 1.442695, %v1930_v60 }
 0xccf   :  { %3121 = vpow2.f32 %v1938_v61 }
 0xcd2   :  { %v1911_v62 = vpop.xlane.xlu0 %1910  ;;  %v1920_v4 = vpop.xlane.xlu1 %1919 }
 0xcd3   :  { %v1931_v63 = vsub.f32 %v1899_v19, %v1911_v62  ;;  %v1934_v46 = vsub.f32 %v3778_v28, %v1920_v4 }
 0xcd5   :  { %v3122_v0 = vpop.eup %3121  ;;  %v1940_v1 = vmul.f32 1.442695, %v1931_v63  ;;  %v1946_v48 = vmul.f32 1.442695, %v1934_v46 }
 0xcd6   :  { %v1954_v2 = vsel %vm549_vm9, %v3122_v0, 0.0 }
 0xcd7   :  { %1955 = vadd.xlane.f32.xlu0 %v1954_v2  ;;  %3123 = vpow2.f32 %v1940_v1 }
 0xcd8   :  { %v1923_v5 = vpop.xlane.xlu2 %1922 }
 0xcd9   :  { %v1935_v40 = vsub.f32 %v1903_v38, %v1923_v5 }
 0xcda   :  { %v1926_v7 = vpop.xlane.xlu0 %1925 }
 0xcdb   :  { %v1936_v8 = vsub.f32 %v1904_v43, %v1926_v7  ;;  %v1948_v12 = vmul.f32 1.442695, %v1935_v40 }
 0xcdd   :  { %v1950_v9 = vmul.f32 1.442695, %v1936_v8  ;;  %v3124_v10 = vpop.eup %3123 }
 0xcde   :  { %v1957_v11 = vsel %vm549_vm9, %v3124_v10, 0.0 }
 0xcdf   :  { %3125 = vpow2.f32 %v1950_v9  ;;  %1958 = vadd.xlane.f32.xlu2 %v1957_v11 }
 0xce0   :  { %3127 = vpow2.f32 %v1948_v12 }
 0xce2   :  { %v1929_v16 = vpop.xlane.xlu1 %1928  ;;  %v1914_v25 = vpop.xlane.xlu0 %1913 }
 0xce3   :  { %v1937_v18 = vsub.f32 %v1905_v52, %v1929_v16  ;;  %v1932_v51 = vsub.f32 %v3785_v49, %v1914_v25 }
 0xce5   :  { %v3126_v21 = vpop.eup %3125  ;;  %v1952_v3 = vmul.f32 1.442695, %v1937_v18  ;;  %v1942_v52 = vmul.f32 1.442695, %v1932_v51 }
 0xce6   :  { %v1972_v20 = vsel %vm549_vm9, %v3126_v21, 0.0  ;;  %v3128_v22 = vpop.eup %3127 }
 0xce7   :  { %1973 = vadd.xlane.f32.xlu0 %v1972_v20  ;;  %3129 = vpow2.f32 %v1952_v3  ;;  %v1969_v24 = vsel %vm549_vm9, %v3128_v22, 0.0 }
 0xcea   :  { %v1917_v17 = vpop.xlane.xlu1 %1916 }
 0xceb   :  { %v1933_v53 = vsub.f32 %v3790_v56, %v1917_v17 }
 0xced   :  { %v3130_v23 = vpop.eup %3129  ;;  %v1944_v57 = vmul.f32 1.442695, %v1933_v53 }
 0xcee   :  { %v1975_v6 = vsel %vm549_vm9, %v3130_v23, 0.0 }
 0xcef   :  { %1970 = vadd.xlane.f32.xlu0 %v1969_v24  ;;  %1976 = vadd.xlane.f32.xlu1 %v1975_v6 }
 0xcf5   :  { %v1639_v26 = vpop.permute.xlu0 %1638 }
 0xd02   :  { %v1637_v31 = vpop.permute.xlu1 %1636 }
 0xd08   :  { %2058 = vxpose.xlu2.b32.start [1/2] (short) (narrow) %v1643_v13, 8 }
 0xd10   :  { %2059 = vxpose.xlu2.b32.end [2/2] (short) (narrow) %v3768_v15, 8 }
 0xd29   :  { %1994 = vxpose.xlu1.b32.start [1/2] (short) (narrow) %v3752_v47, 8 }
 0xd31   :  { %1995 = vxpose.xlu1.b32.end [2/2] (short) (narrow) %v3760_v58, 8 }
 0xd4a   :  { %v1956_v27 = vpop.xlane.xlu0 %1955 }
 0xd52   :  { %v1959_v29 = vpop.xlane.xlu2 %1958 }
 0xd53   :  { %3131 = vrcp.f32 %v1959_v29 }
 0xd54   :  { %3133 = vrcp.f32 %v1956_v27 }
 0xd59   :  { %v3132_v19 = vpop.eup %3131 }
 0xd5a   :  { %v1974_v30 = vpop.xlane.xlu0 %1973  ;;  %v1987_v32 = vmul.f32 %v3132_v19, %v3124_v10  ;;  %v3134_v33 = vpop.eup %3133 }
 0xd5b   :  { %v1986_v34 = vmul.f32 %v3134_v33, %v3122_v0 }
 0xd5c   :  { %2945 = vmatpush.xpose.msk.msrb.mxu3 %vm549_vm9, %v1987_v32 }
 0xd60   :  { %2946 = vmatpush.xpose.msk.msrb.mxu3 %vm549_vm9, %v1986_v34 }
 0xd62   :  { %v1971_v15 = vpop.xlane.xlu0 %1970  ;;  %v1977_v36 = vpop.xlane.xlu1 %1976 }
 0xd63   :  { %3135 = vrcp.f32 %v1971_v15 }
 0xd64   :  { %3137 = vrcp.f32 %v1977_v36 }
 0xd65   :  { %3139 = vrcp.f32 %v1974_v30 }
 0xd66   :  { %3141 = vpow2.f32 %v1946_v48 }
 0xd67   :  { %3143 = vpow2.f32 %v1942_v52 }
 0xd68   :  { %3145 = vpow2.f32 %v1944_v57 }
 0xd69   :  { %v3136_v37 = vpop.eup %3135 }
 0xd6a   :  { %v3138_v38 = vpop.eup %3137  ;;  %v1991_v41 = vmul.f32 %v3136_v37, %v3128_v22 }
 0xd6b   :  { %v1993_v43 = vmul.f32 %v3138_v38, %v3130_v23  ;;  %v3140_v44 = vpop.eup %3139 }
 0xd6c   :  { %2951 = vmatpush.xpose.msk.msrb.mxu2 %vm549_vm9, %v1991_v41  ;;  %v1992_v45 = vmul.f32 %v3140_v44, %v3126_v21  ;;  %v3142_v42 = vpop.eup %3141 }
 0xd6d   :  { %2954 = vmatpush.xpose.msk.msra.mxu3 %vm549_vm9, %v1993_v43  ;;  %v1966_v55 = vsel %vm549_vm9, %v3142_v42, 0.0  ;;  %v3144_v13 = vpop.eup %3143 }
 0xd71   :  { %2955 = vmatpush.xpose.msk.msra.mxu3 %vm549_vm9, %v1992_v45 }
 0xd79   :  { %1648 = vrot.lane.b32.xlu2 %v3752_v47, %s3277_s6  ;;  %v1960_v47 = vsel %vm549_vm9, %v3144_v13, 0.0 }
 0xd81   :  { %1650 = vrot.lane.b32.xlu2 %v3760_v58, %s3277_s6  ;;  %v3146_v58 = vpop.eup %3145  ;;  %s2863_s6 = sshll.u32 %s4042_s7, 4  ;;  %s2864_s6 = int_to_ptr.hbm [resolvable:$true] %s2863_s6 }
 0xd82   :  { %v1963_v28 = vsel %vm549_vm9, %v3146_v58, 0.0 }
 0xda1   :  { %v2074_v59 = vpop.trf.xlu2 }
 0xdaa   :  { %1967 = vadd.xlane.f32.xlu2 %v1966_v55 }
 0xdb2   :  { %1961 = vadd.xlane.f32.xlu2 %v1960_v47 }
 0xdba   :  { %1964 = vadd.xlane.f32.xlu2 %v1963_v28 }
 0xdcd   :  { %v2010_v49 = vpop.trf.xlu1 }
 0xdce   :  { %2947 = vmatmul.msk.f32.vlgmr.msrb.gmra.mxu3 %vm549_vm9, %v2010_v49 }
 0xdd3   :  { %v1649_v60 = vpop.permute.xlu2 %1648 }
 0xdd4   :  { %2090 = vxpose.xlu0.b32.start [1/2] (short) (narrow) %v1649_v60, 8 }
 0xddb   :  { %v1651_v56 = vpop.permute.xlu2 %1650 }
 0xddc   :  { %2091 = vxpose.xlu0.b32.end [2/2] (short) (narrow) %v1651_v56, 8 }
 0xde3   :  { %2026 = vxpose.xlu2.b32.start [1/2] (short) (narrow) %v1637_v31, 8 }
 0xdeb   :  { %2027 = vxpose.xlu2.b32.end [2/2] (short) (narrow) %v1639_v26, 8 }
 0xe1d   :  { %v1968_v61 = vpop.xlane.xlu2 %1967 }
 0xe1e   :  { %3147 = vrcp.f32 %v1968_v61 }
 0xe24   :  { %v3148_v62 = vpop.eup %3147 }
 0xe25   :  { %v1962_v63 = vpop.xlane.xlu2 %1961  ;;  %v1990_v0 = vmul.f32 %v3148_v62, %v3142_v42 }
 0xe27   :  { %2952 = vmatpush.xpose.msk.msrb.mxu2 %vm549_vm9, %v1990_v0 }
 0xe2a   :  { %2953 = vmatmul.msk.f32.vlgmr.msrb.gmra.mxu2 %vm549_vm9, %v2074_v59 }
 0xe2d   :  { %v1965_v1 = vpop.xlane.xlu2 %1964 }
 0xe2e   :  { %3149 = vrcp.f32 %v1965_v1 }
 0xe2f   :  { %3151 = vrcp.f32 %v1962_v63 }
 0xe34   :  { %v3150_v2 = vpop.eup %3149 }
 0xe35   :  { %v1989_v4 = vmul.f32 %v3150_v2, %v3146_v58  ;;  %v3152_v5 = vpop.eup %3151 }
 0xe36   :  { %v1988_v7 = vmul.f32 %v3152_v5, %v3144_v13 }
 0xe37   :  { %2948 = vmatpush.xpose.msk.msrb.mxu1 %vm549_vm9, %v1989_v4 }
 0xe3b   :  { %2949 = vmatpush.xpose.msk.msrb.mxu1 %vm549_vm9, %v1988_v7 }
 0xe51   :  { %v2148_v8 = vpop.f32.mrf.mxu3 }
 0xe52   :  { %2238 = vxpose.xlu0.b32.start.end [1/1] (short) (narrow) %v2148_v8, 16 }
 0xe78   :  { %v2106_v40 = vpop.trf.xlu0 }
 0xe79   :  { %2956 = vmatmul.msk.f32.vlgmr.msra.gmra.mxu3 %vm549_vm9, %v2106_v40 }
 0xe7c   :  { %v2042_v9 = vpop.trf.xlu2 }
 0xe7d   :  { %2950 = vmatmul.msk.f32.vlgmr.msrb.gmra.mxu1 %vm549_vm9, %v2042_v9 }
 0xead   :  { %v2206_v10 = vpop.f32.mrf.mxu2 }
 0xeae   :  { %2302 = vxpose.xlu0.b32.start.end [1/1] (short) (narrow) %v2206_v10, 16 }
 0xef6   :  { %v2254_v16 = vpop.trf.xlu0 }
 0xef7   :  { %v2368_v3 = vrot.slane %v2254_v16, 4 }
 0xefa   :  { %v2177_v11 = vpop.f32.mrf.mxu1 }
 0xefb   :  { %2270 = vxpose.xlu2.b32.start.end [1/1] (short) (narrow) %v2177_v11, 16 }
 0xefc   :  { %v2235_v12 = vpop.f32.mrf.mxu3 }
 0xefd   :  { %2334 = vxpose.xlu1.b32.start.end [1/1] (short) (narrow) %v2235_v12, 16 }
 0xefe   :  { %v2255_v18 = vpop.trf.xlu0 }
 0xeff   :  { %v2424_v26 = vrot.slane %v2255_v18, 4 }
 0xf52   :  { %v2318_v21 = vpop.trf.xlu0 }
 0xf53   :  { %v2366_v20 = vrot.slane %v2318_v21, 4  ;;  %v2369_v24 = vsel %vm1011_vm10, %v2318_v21, %v2368_v3 }
 0xf54   :  { %v2377_v17 = vperm.slane %v2369_v24, %v3492_v39 }
 0xf55   :  { %v2367_v6 = vsel %vm1011_vm10, %v2366_v20, %v2254_v16 }
 0xf56   :  { %v2373_v29 = vperm.slane %v2367_v6, %v3492_v39  ;;  %v2404_v34 = vrot.slane %v2377_v17, 4 }
 0xf58   :  { %v2392_v36 = vrot.slane %v2373_v29, 4 }
 0xf5a   :  { %v2319_v23 = vpop.trf.xlu0 }
 0xf5b   :  { %v2422_v25 = vrot.slane %v2319_v23, 4  ;;  %v2425_v33 = vsel %vm1011_vm10, %v2319_v23, %v2424_v26 }
 0xf5c   :  { %v2433_v46 = vperm.slane %v2425_v33, %v3492_v39 }
 0xf5d   :  { %v2423_v30 = vsel %vm1011_vm10, %v2422_v25, %v2255_v18 }
 0xf5e   :  { %v2429_v38 = vperm.slane %v2423_v30, %v3492_v39  ;;  %v2460_v28 = vrot.slane %v2433_v46, 4 }
 0xf60   :  { %v2448_v58 = vrot.slane %v2429_v38, 4 }
 0xf94   :  { %v2286_v22 = vpop.trf.xlu2 }
 0xf95   :  { %v2380_v27 = vrot.slane %v2286_v22, 4 }
 0xf9c   :  { %v2287_v41 = vpop.trf.xlu2 }
 0xf9d   :  { %v2436_v53 = vrot.slane %v2287_v41, 4 }
 0xfa1   :  { %v2350_v19 = vpop.trf.xlu1 }
 0xfa2   :  { %v2378_v31 = vrot.slane %v2350_v19, 4  ;;  %v2381_v32 = vsel %vm1011_vm10, %v2350_v19, %v2380_v27 }
 0xfa3   :  { %v2389_v15 = vperm.slane %v2381_v32, %v3492_v39 }
 0xfa4   :  { %v2379_v37 = vsel %vm1011_vm10, %v2378_v31, %v2286_v22 }
 0xfa5   :  { %v2385_v43 = vperm.slane %v2379_v37, %v3492_v39  ;;  %v2402_v44 = vrot.slane %v2389_v15, 4  ;;  %v2405_v45 = vsel %vm1011_vm10, %v2389_v15, %v2404_v34 }
 0xfa6   :  { %v2413_v48 = vperm.slane %v2405_v45, %v3499_v54 }
 0xfa7   :  { %v2390_v51 = vrot.slane %v2385_v43, 4  ;;  %v2393_v52 = vsel %vm1011_vm10, %v2385_v43, %v2392_v36  ;;  %v2403_v42 = vsel %vm1011_vm10, %v2402_v44, %v2377_v17 }
 0xfa8   :  { %v2401_v55 = vperm.slane %v2393_v52, %v3499_v54  ;;  %v2409_v57 = vperm.slane %v2403_v42, %v3499_v54  ;;  %v2420_v13 = vrot.slane %v2413_v48, 4 }
 0xfa9   :  { %v2391_v47 = vsel %vm1011_vm10, %v2390_v51, %v2373_v29  ;;  %v2351_v59 = vpop.trf.xlu1 }
 0xfaa   :  { %v2397_v49 = vperm.slane %v2391_v47, %v3499_v54  ;;  %v2416_v60 = vrot.slane %v2401_v55, 4  ;;  %v2418_v56 = vrot.slane %v2409_v57, 4  ;;  %v2421_v61 = vsel %vm1011_vm10, 0.0, %v2420_v13 }
 0xfab   :  { %v2489_v62 = vsel %vm1011_vm10, %v2420_v13, %v2409_v57  ;;  %v2494_v63 = vrot.slane %v2421_v61, 4  ;;  %v2434_v0 = vrot.slane %v2351_v59, 4  ;;  %v2437_v1 = vsel %vm1011_vm10, %v2351_v59, %v2436_v53 }
 0xfac   :  { %v2414_v2 = vrot.slane %v2397_v49, 4  ;;  %v2417_v4 = vsel %vm1011_vm10, 0.0, %v2416_v60  ;;  %v2419_v5 = vsel %vm1011_vm10, 0.0, %v2418_v56  ;;  %v2493_v7 = vperm.slane %v2489_v62, %v3492_v39 }
 0xfad   :  { %v2483_v8 = vrot.slane %v2417_v4, 4  ;;  %v2435_v40 = vsel %vm1011_vm10, %v2434_v0, %v2287_v41  ;;  %v2445_v9 = vperm.slane %v2437_v1, %v3492_v39  ;;  %v2478_v10 = vsel %vm1011_vm10, %v2416_v60, %v2397_v49 }
 0xfae   :  { %v2441_v11 = vperm.slane %v2435_v40, %v3492_v39  ;;  %v2415_v12 = vsel %vm1011_vm10, 0.0, %v2414_v2  ;;  %v2482_v16 = vperm.slane %v2478_v10, %v3492_v39  ;;  %v2495_v18 = vsel %vm1011_vm10, %v2494_v63, %v2419_v5 }
 0xfaf   :  { %v2458_v21 = vrot.slane %v2445_v9, 4  ;;  %v2461_v3 = vsel %vm1011_vm10, %v2445_v9, %v2460_v28  ;;  %v2484_v20 = vsel %vm1011_vm10, %v2483_v8, %v2415_v12  ;;  %v2499_v22 = vperm.slane %v2495_v18, %v3492_v39 }
 0xfb0   :  { %v2446_v23 = vrot.slane %v2441_v11, 4  ;;  %v2449_v24 = vsel %vm1011_vm10, %v2441_v11, %v2448_v58  ;;  %v2469_v6 = vperm.slane %v2461_v3, %v3499_v54  ;;  %v2488_v25 = vperm.slane %v2484_v20, %v3492_v39 }
 0xfb1   :  { %v2457_v26 = vperm.slane %v2449_v24, %v3499_v54  ;;  %v2459_v27 = vsel %vm1011_vm10, %v2458_v21, %v2433_v46  ;;  %v2502_v17 = vrot.slane %v2482_v16, 4  ;;  %v2514_v29 = vrot.slane %v2493_v7, 4 }
 0xfb2   :  { %v2447_v19 = vsel %vm1011_vm10, %v2446_v23, %v2429_v38  ;;  %v2465_v30 = vperm.slane %v2459_v27, %v3499_v54  ;;  %v2476_v31 = vrot.slane %v2469_v6, 4  ;;  %v2500_v32 = vrot.slane %v2488_v25, 4 }
 0xfb3   :  { %v2453_v33 = vperm.slane %v2447_v19, %v3499_v54  ;;  %v2472_v34 = vrot.slane %v2457_v26, 4  ;;  %v2503_v15 = vsel %vm1011_vm10, %v2488_v25, %v2502_v17  ;;  %v2515_v36 = vsel %vm1011_vm10, %v2499_v22, %v2514_v29  ;;  %v2959_v29 = vld [vmem:[%s4037_s2 + $0xf0] sm:$0xff]  ;;  %v2958_v19 = vld [vmem:[%s4037_s2 + $0xe8] sm:$0xff] }
 0xfb4   :  { %v2474_v37 = vrot.slane %v2465_v30, 4  ;;  %v2477_v41 = vsel %vm1011_vm10, 0.0, %v2476_v31  ;;  %v2543_v43 = vsel %vm1011_vm10, %v2476_v31, %v2465_v30  ;;  %v2511_v44 = vperm.slane %v2503_v15, %v3499_v54  ;;  %v2957_v30 = vld [vmem:[%s4037_s2 + $0xe0] sm:$0xff] }
 0xfb5   :  { %v2470_v45 = vrot.slane %v2453_v33, 4  ;;  %v2473_v38 = vsel %vm1011_vm10, 0.0, %v2472_v34  ;;  %v2547_v46 = vperm.slane %v2543_v43, %v3492_v39  ;;  %v2548_v48 = vrot.slane %v2477_v41, 4 }
 0xfb6   :  { %v2475_v51 = vsel %vm1011_vm10, 0.0, %v2474_v37  ;;  %v2537_v52 = vrot.slane %v2473_v38, 4  ;;  %v2523_v42 = vperm.slane %v2515_v36, %v3499_v54  ;;  %v2530_v53 = vrot.slane %v2511_v44, 4 }
 0xfb7   :  { %v2501_v55 = vsel %vm1011_vm10, %v2500_v32, %v2482_v16  ;;  %v2512_v57 = vrot.slane %v2499_v22, 4  ;;  %v2471_v13 = vsel %vm1011_vm10, 0.0, %v2470_v45  ;;  %v2532_v47 = vsel %vm1011_vm10, %v2472_v34, %v2453_v33 }
 0xfb8   :  { %v2528_v58 = vrot.slane %v2523_v42, 4  ;;  %v2531_v28 = vsel %vm1011_vm10, %v2523_v42, %v2530_v53  ;;  %v2507_v59 = vperm.slane %v2501_v55, %v3499_v54  ;;  %v2536_v49 = vperm.slane %v2532_v47, %v3492_v39 }
 0xfb9   :  { %2604 = vrot.lane.b32.xlu0 %v2531_v28, %s3283_s19  ;;  %v2513_v60 = vsel %vm1011_vm10, %v2512_v57, %v2493_v7  ;;  %v2538_v56 = vsel %vm1011_vm10, %v2537_v52, %v2471_v13  ;;  %v2549_v61 = vsel %vm1011_vm10, %v2548_v48, %v2475_v51  ;;  %v2568_v62 = vrot.slane %v2547_v46, 4 }
 0xfba   :  { %v2529_v63 = vsel %vm1011_vm10, %v2528_v58, %v2511_v44  ;;  %v2519_v0 = vperm.slane %v2513_v60, %v3499_v54  ;;  %v2526_v1 = vrot.slane %v2507_v59, 4  ;;  %v2542_v2 = vperm.slane %v2538_v56, %v3492_v39 }
 0xfbb   :  { %2596 = vrot.lane.b32.xlu2 %v2529_v63, %s3282_s18  ;;  %v2553_v4 = vperm.slane %v2549_v61, %v3492_v39  ;;  %v2556_v5 = vrot.slane %v2536_v49, 4  ;;  %v2965_v63 = vld [vmem:[%s4038_s3 + $0x30] sm:$0xff] }
 0xfbc   :  { %v2524_v8 = vrot.slane %v2519_v0, 4  ;;  %v2527_v7 = vsel %vm1011_vm10, %v2519_v0, %v2526_v1  ;;  %v2554_v40 = vrot.slane %v2542_v2, 4  ;;  %v2964_v0 = vld [vmem:[%s4038_s3 + $0x28] sm:$0xff]  ;;  %v2963_v1 = vld [vmem:[%s4038_s3 + $0x20] sm:$0xff] }
 0xfbd   :  { %2588 = vrot.lane.b32.xlu1 %v2527_v7, %s3273_s10  ;;  %v2557_v9 = vsel %vm1011_vm10, %v2542_v2, %v2556_v5  ;;  %v2569_v10 = vsel %vm1011_vm10, %v2553_v4, %v2568_v62  ;;  %v2566_v11 = vrot.slane %v2553_v4, 4  ;;  %v2966_v62 = vld [vmem:[%s4038_s3 + $0x38] sm:$0xff] }
 0xfbe   :  { %v2577_v12 = vperm.slane %v2569_v10, %v3499_v54  ;;  %v2555_v16 = vsel %vm1011_vm10, %v2554_v40, %v2536_v49  ;;  %v2525_v18 = vsel %vm1011_vm10, %v2524_v8, %v2507_v59  ;;  %v2565_v21 = vperm.slane %v2557_v9, %v3499_v54  ;;  %2731 = vmatpush.msra.mxu1 %v2966_v62 }
 0xfbf   :  { %v2567_v39 = vsel %vm1011_vm10, %v2566_v11, %v2547_v46  ;;  %v2561_v20 = vperm.slane %v2555_v16, %v3499_v54  ;;  %v3064_v46 = vld [vmem:[#allocation7 + $0xe] ss:$0 sm:$0xff] }
 0xfc0   :  { %v2582_v3 = vrot.slane %v2577_v12, 4  ;;  %v2573_v22 = vperm.slane %v2567_v39, %v3499_v54  ;;  %v2584_v27 = vrot.slane %v2565_v21, 4  ;;  %v2960_v54 = vld [vmem:[%s4037_s2 + $0xf8] sm:$0xff]  ;;  %2732 = vmatpush.msra.mxu1 %v2965_v63  ;;  %v2983_v39 = vld [vmem:[%s4040_s5 + $0xe8] sm:$0xff] }
 0xfc1   :  { %v2580_v25 = vrot.slane %v2561_v20, 4  ;;  %2640 = vmatpush.msra.mxu0 %v2960_v54  ;;  %v2985_v11 = vld [vmem:[%s4040_s5 + $0xf8] sm:$0xff] }
 0xfc2   :  { %v2578_v23 = vrot.slane %v2573_v22, 4  ;;  %v2583_v24 = vsel %vm1011_vm10, %v2582_v3, %v2565_v21  ;;  %v2585_v17 = vsel %vm1011_vm10, %v2577_v12, %v2584_v27  ;;  %2733 = vmatpush.msra.mxu1 %v2964_v0  ;;  %v2984_v12 = vld [vmem:[%s4040_s5 + $0xf0] sm:$0xff]  ;;  %2778 = vmatpush.msra.mxu2 %v2985_v11 }
 0xfc3   :  { %v2581_v26 = vsel %vm1011_vm10, %v2573_v22, %v2580_v25  ;;  %2641 = vmatpush.msra.mxu0 %v2959_v29 }
 0xfc4   :  { %v2579_v6 = vsel %vm1011_vm10, %v2578_v23, %v2561_v20  ;;  %2734 = vmatpush.msra.mxu1 %v2963_v1  ;;  %2779 = vmatpush.msra.mxu2 %v2984_v12  ;;  %v3066_v23 = vld [vmem:[#allocation7 + $0x10] ss:$0 sm:$0xff] }
 0xfc5   :  { %2598 = vrot.lane.b32.xlu1 %v2583_v24, %s3282_s18  ;;  %2642 = vmatpush.msra.mxu0 %v2958_v19  ;;  %v2982_v24 = vld [vmem:[%s4040_s5 + $0xe0] sm:$0xff] }
 0xfc6   :  { %2780 = vmatpush.msra.mxu2 %v2983_v39 }
 0xfc7   :  { %2643 = vmatpush.msra.mxu0 %v2957_v30 }
 0xfc8   :  { %2781 = vmatpush.msra.mxu2 %v2982_v24 }
 0xfcd   :  { %2590 = vrot.lane.b32.xlu1 %v2581_v26, %s3273_s10 }
 0xfd5   :  { %2606 = vrot.lane.b32.xlu1 %v2585_v17, %s3283_s19 }
0x1015   :  { %v2597_v32 = vpop.permute.xlu2 %2596 }
0x102b   :  { %v2605_v34 = vpop.permute.xlu0 %2604 }
0x102f   :  { %v2589_v31 = vpop.permute.xlu1 %2588 }
0x1030   :  { %v2610_v33 = vsel %vm424_vm8, %v2525_v18, %v2589_v31  ;;  %v3065_v18 = vld [vmem:[#allocation7 + $0xf] ss:$0 sm:$0xff] }
0x1031   :  { %v2612_v15 = vsel %vm549_vm9, %v2610_v33, %v2597_v32 }
0x1032   :  { %v2614_v36 = vsel %vm1259_vm11, %v2612_v15, %v2605_v34  ;;  %v2981_v15 = vld [vmem:[%s4040_s5 + $0xd8] sm:$0xff] }
0x1033   :  { %2961 = vmatmul.msk.f32.vlgmr.msra.gmra.mxu0 %vm92_vm0, %v2614_v36  ;;  %2782 = vmatpush.msra.mxu2 %v2981_v15  ;;  %v2980_v36 = vld [vmem:[%s4040_s5 + $0xd0] sm:$0xff]  ;;  %v3069_v15 = vld [vmem:[#allocation7 + $0x12] ss:$0 sm:$0xff] }
0x1035   :  { %2783 = vmatpush.msra.mxu2 %v2980_v36 }
0x1037   :  { %v2599_v37 = vpop.permute.xlu1 %2598 }
0x103f   :  { %v2591_v41 = vpop.permute.xlu1 %2590 }
0x1040   :  { %v2611_v43 = vsel %vm424_vm8, %v2579_v6, %v2591_v41  ;;  %v2978_v41 = vld [vmem:[%s4040_s5 + $0xc0] sm:$0xff] }
0x1041   :  { %v2613_v45 = vsel %vm549_vm9, %v2611_v43, %v2599_v37  ;;  %v2979_v37 = vld [vmem:[%s4040_s5 + $0xc8] sm:$0xff]  ;;  %v2977_v43 = vld [vmem:[%s4040_s5 + $0xb8] sm:$0xff] }
0x1042   :  { %2784 = vmatpush.msra.mxu2 %v2979_v37 }
0x1044   :  { %2785 = vmatpush.msra.mxu2 %v2978_v41 }
0x1046   :  { %2786 = vmatpush.msra.mxu2 %v2977_v43 }
0x1047   :  { %v2607_v44 = vpop.permute.xlu1 %2606 }
0x1048   :  { %v2615_v38 = vsel %vm1259_vm11, %v2613_v45, %v2607_v44  ;;  %v2976_v44 = vld [vmem:[%s4040_s5 + $0xb0] sm:$0xff]  ;;  %v2975_v45 = vld [vmem:[%s4040_s5 + $0xa8] sm:$0xff] }
0x1049   :  { %2962 = vmatmul.msk.f32.gmra.mxu0 %vm92_vm0, %v2615_v38  ;;  %2787 = vmatpush.msra.mxu2 %v2976_v44  ;;  %v2974_v38 = vld [vmem:[%s4040_s5 + $0xa0] sm:$0xff] }
0x104a   :  { %v3070_v44 = vld [vmem:[#allocation7 + $0x13] ss:$0 sm:$0xff] }
0x104b   :  { %2788 = vmatpush.msra.mxu2 %v2975_v45 }
0x104d   :  { %2789 = vmatpush.msra.mxu2 %v2974_v38 }
0x10b0   :  { %v2645_v48 = vpop.f32.mrf.mxu0 }
0x10b1   :  { %v2646_v51 = vadd.f32 %v3064_v46, %v2645_v48  ;;  %v2972_v48 = vld [vmem:[%s4040_s5 + $0x90] sm:$0xff] }
0x10b3   :  { %v3935_v52 = vadd.f32 %v2646_v51, %v3686_v35  ;;  %v2971_v51 = vld [vmem:[%s4040_s5 + $0x88] sm:$0xff] }
0x10b5   :  { %v2653_v42 = vsel %vm92_vm0, %v3935_v52, 0.0 }
0x10b6   :  { %2654 = vadd.xlane.f32.xlu2 %v2653_v42  ;;  %v2970_v42 = vld [vmem:[%s4040_s5 + $0x80] sm:$0xff] }
0x10c6   :  { %v2648_v53 = vpop.f32.mrf.mxu0 }
0x10c7   :  { %v2649_v55 = vadd.f32 %v3064_v46, %v2648_v53  ;;  %v2973_v46 = vld [vmem:[%s4040_s5 + $0x98] sm:$0xff]  ;;  %v3067_v53 = vld [vmem:[%s4039_s4 + $0x1] ss:$0 sm:$0xff]  ;;  %s3284_s4 = smov [#allocation8]  }
0x10c8   :  { %2790 = vmatpush.msra.mxu2 %v2973_v46  ;;  %s2861_s5 = sshll.u32 %s3284_s4, 4  ;;  %s2862_s5 = int_to_ptr.vmem [resolvable:$true] %s2861_s5 }
0x10c9   :  { %v3940_v57 = vadd.f32 %v2649_v55, %v3691_v50 }
0x10ca   :  { %2791 = vmatpush.msra.mxu2 %v2972_v48 }
0x10cb   :  { %v2656_v13 = vsel %vm92_vm0, %v3940_v57, 0.0 }
0x10cc   :  { %2657 = vadd.xlane.f32.xlu1 %v2656_v13  ;;  %2792 = vmatpush.msra.mxu2 %v2971_v51 }
0x10ce   :  { %2793 = vmatpush.msra.mxu2 %v2970_v42 }
0x1129   :  { %v2655_v47 = vpop.xlane.xlu2 %2654 }
0x112a   :  { %v2659_v58 = vmul.f32 %v2655_v47, %v3351_v14 }
0x112c   :  { %v2661_v28 = vsub.f32 %v3935_v52, %v2659_v58 }
0x112e   :  { %v2663_v35 = vmul.f32 %v2661_v28, %v2661_v28 }
0x1130   :  { %v2665_v59 = vsel %vm92_vm0, %v2663_v35, 0.0 }
0x1131   :  { %2666 = vadd.xlane.f32.xlu0 %v2665_v59 }
0x113f   :  { %v2658_v49 = vpop.xlane.xlu1 %2657 }
0x1140   :  { %v2660_v60 = vmul.f32 %v2658_v49, %v3351_v14 }
0x1142   :  { %v2662_v56 = vsub.f32 %v3940_v57, %v2660_v60 }
0x1144   :  { %v2664_v50 = vmul.f32 %v2662_v56, %v2662_v56 }
0x1146   :  { %v2668_v61 = vsel %vm92_vm0, %v2664_v50, 0.0 }
0x1147   :  { %2669 = vadd.xlane.f32.xlu2 %v2668_v61 }
0x11a4   :  { %v2667_v2 = vpop.xlane.xlu0 %2666 }
0x11a5   :  { %v2671_v4 = vmul.f32 %v2667_v2, %v3351_v14 }
0x11a7   :  { %v2673_v5 = vadd.f32 1e-05, %v2671_v4 }
0x11a9   :  { %3153 = vrsqrt.f32 %v2673_v5  ;;  %vm2681_vm9 = vweird.f32 %v2673_v5 }
0x11af   :  { %v3154_v8 = vpop.eup %3153 }
0x11b0   :  { %v2676_v7 = vmul.f32 %v3154_v8, %v2673_v5  ;;  %vm2682_vm8 = vweird.f32 %v3154_v8 }
0x11b1   :  { %vm2683_vm10 = vmor %vm2681_vm9, %vm2682_vm8 }
0x11b2   :  { %v2677_v40 = vmul.f32 %v3154_v8, %v2676_v7 }
0x11b4   :  { %v2678_v9 = vmul.f32 0.5, %v2677_v40 }
0x11b6   :  { %v2679_v10 = vsub.f32 1.5, %v2678_v9  ;;  %v3068_v9 = vld [vmem:[#allocation7 + $0x11] ss:$0 sm:$0xff] }
0x11b8   :  { %v2680_v16 = vmul.f32 %v3154_v8, %v2679_v10 }
0x11ba   :  { %v2684_v21 = vsel %vm2683_vm10, %v3154_v8, %v2680_v16  ;;  %v2670_v3 = vpop.xlane.xlu2 %2669 }
0x11bb   :  { %v2695_v20 = vmul.f32 %v2684_v21, %v2661_v28  ;;  %v2672_v22 = vmul.f32 %v2670_v3, %v3351_v14 }
0x11bd   :  { %v2698_v6 = vmul.f32 %v3065_v18, %v2695_v20  ;;  %v2674_v25 = vadd.f32 1e-05, %v2672_v22 }
0x11bf   :  { %3155 = vrsqrt.f32 %v2674_v25  ;;  %v2701_v26 = vadd.f32 %v3066_v23, %v2698_v6  ;;  %vm2691_vm13 = vweird.f32 %v2674_v25 }
0x11c1   :  { %2968 = vmatmul.msk.f32.vlgmr.msra.gmra.mxu1 %vm92_vm0, %v2701_v26 }
0x11c5   :  { %v3156_v27 = vpop.eup %3155 }
0x11c6   :  { %v2686_v17 = vmul.f32 %v3156_v27, %v2674_v25  ;;  %vm2692_vm11 = vweird.f32 %v3156_v27 }
0x11c7   :  { %vm2693_vm14 = vmor %vm2691_vm13, %vm2692_vm11 }
0x11c8   :  { %v2687_v54 = vmul.f32 %v3156_v27, %v2686_v17 }
0x11ca   :  { %v2688_v29 = vmul.f32 0.5, %v2687_v54 }
0x11cc   :  { %v2689_v19 = vsub.f32 1.5, %v2688_v29 }
0x11ce   :  { %v2690_v30 = vmul.f32 %v3156_v27, %v2689_v19 }
0x11d0   :  { %v2694_v31 = vsel %vm2693_vm14, %v3156_v27, %v2690_v30 }
0x11d1   :  { %v2696_v32 = vmul.f32 %v2694_v31, %v2662_v56 }
0x11d3   :  { %v2699_v33 = vmul.f32 %v3065_v18, %v2696_v32 }
0x11d5   :  { %v2702_v34 = vadd.f32 %v3066_v23, %v2699_v33 }
0x11d7   :  { %2969 = vmatmul.msk.f32.gmra.mxu1 %vm92_vm0, %v2702_v34 }
0x123e   :  { %v2736_v55 = vpop.f32.mrf.mxu1 }
0x123f   :  { %v2737_v13 = vadd.f32 %v3067_v53, %v2736_v55 }
0x1241   :  { %v2744_v47 = vmul.f32 0.044715, %v2737_v13  ;;  %v2742_v60 = vmul.f32 0.5, %v2737_v13 }
0x1243   :  { %v2746_v58 = vmul.f32 %v2744_v47, %v2737_v13 }
0x1245   :  { %v2748_v28 = vmul.f32 %v2746_v58, %v2737_v13 }
0x1247   :  { %v2750_v35 = vadd.f32 %v2748_v28, %v2737_v13 }
0x1249   :  { %v2752_v59 = vmul.f32 0.7978846, %v2750_v35 }
0x124b   :  { %3157 = vtanh.f32 %v2752_v59 }
0x1251   :  { %v3158_v49 = vpop.eup %3157 }
0x1252   :  { %v2756_v56 = vadd.f32 1.0, %v3158_v49 }
0x1254   :  { %v2739_v50 = vpop.f32.mrf.mxu1  ;;  %v2758_v61 = vmul.f32 %v2756_v56, %v2742_v60 }
0x1255   :  { %v2740_v62 = vadd.f32 %v3067_v53, %v2739_v50 }
0x1256   :  { %2794 = vmatmul.f32.vlgmr.msra.gmra.mxu2 %v2758_v61 }
0x1257   :  { %v2745_v63 = vmul.f32 0.044715, %v2740_v62  ;;  %v2743_v8 = vmul.f32 0.5, %v2740_v62 }
0x1259   :  { %v2747_v0 = vmul.f32 %v2745_v63, %v2740_v62 }
0x125b   :  { %v2749_v1 = vmul.f32 %v2747_v0, %v2740_v62 }
0x125d   :  { %v2751_v2 = vadd.f32 %v2749_v1, %v2740_v62 }
0x125f   :  { %v2753_v4 = vmul.f32 0.7978846, %v2751_v2 }
0x1261   :  { %3159 = vtanh.f32 %v2753_v4 }
0x1267   :  { %v3160_v5 = vpop.eup %3159 }
0x1268   :  { %v2757_v7 = vadd.f32 1.0, %v3160_v5 }
0x126a   :  { %v2759_v40 = vmul.f32 %v2757_v7, %v2743_v8 }
0x126c   :  { %2797 = vmatmul.f32.gmra.mxu2 %v2759_v40 }
0x12d9   :  { %v2795_v10 = vpop.f32.mrf.mxu2 }
0x12da   :  { %v2796_v11 = vadd.f32 %v3068_v9, %v2795_v10 }
0x12dc   :  { %v2801_v12 = vadd.f32 %v2796_v11, %v3935_v52 }
0x12de   :  { %v2805_v16 = vsel %vm92_vm0, %v2801_v12, 0.0 }
0x12df   :  { %2806 = vadd.xlane.f32.xlu1 %v2805_v16 }
0x12ef   :  { %v2798_v18 = vpop.f32.mrf.mxu2 }
0x12f0   :  { %v2799_v39 = vadd.f32 %v3068_v9, %v2798_v18 }
0x12f2   :  { %v2802_v21 = vadd.f32 %v2799_v39, %v3940_v57 }
0x12f4   :  { %v2808_v3 = vsel %vm92_vm0, %v2802_v21, 0.0 }
0x12f5   :  { %2809 = vadd.xlane.f32.xlu0 %v2808_v3 }
0x1352   :  { %v2807_v20 = vpop.xlane.xlu1 %2806 }
0x1353   :  { %v2811_v22 = vmul.f32 %v2807_v20, %v3351_v14 }
0x1355   :  { %v2813_v23 = vsub.f32 %v2801_v12, %v2811_v22 }
0x1357   :  { %v2815_v24 = vmul.f32 %v2813_v23, %v2813_v23 }
0x1359   :  { %v2817_v6 = vsel %vm92_vm0, %v2815_v24, 0.0 }
0x135a   :  { %2818 = vadd.xlane.f32.xlu2 %v2817_v6 }
0x1368   :  { %v2810_v25 = vpop.xlane.xlu0 %2809 }
0x1369   :  { %v2812_v52 = vmul.f32 %v2810_v25, %v3351_v14 }
0x136b   :  { %v2814_v26 = vsub.f32 %v2802_v21, %v2812_v52 }
0x136d   :  { %v2816_v27 = vmul.f32 %v2814_v26, %v2814_v26 }
0x136f   :  { %v2820_v17 = vsel %vm92_vm0, %v2816_v27, 0.0 }
0x1370   :  { %2821 = vadd.xlane.f32.xlu1 %v2820_v17 }
0x13cd   :  { %v2819_v57 = vpop.xlane.xlu2 %2818 }
0x13ce   :  { %v2823_v54 = vmul.f32 %v2819_v57, %v3351_v14 }
0x13d0   :  { %v2825_v29 = vadd.f32 1e-05, %v2823_v54 }
0x13d2   :  { %3161 = vrsqrt.f32 %v2825_v29  ;;  %vm2833_vm1 = vweird.f32 %v2825_v29 }
0x13d8   :  { %v3162_v19 = vpop.eup %3161 }
0x13d9   :  { %v2828_v30 = vmul.f32 %v3162_v19, %v2825_v29  ;;  %vm2834_vm15 = vweird.f32 %v3162_v19 }
0x13da   :  { %vm2835_vm2 = vmor %vm2833_vm1, %vm2834_vm15 }
0x13db   :  { %v2829_v31 = vmul.f32 %v3162_v19, %v2828_v30 }
0x13dd   :  { %v2830_v32 = vmul.f32 0.5, %v2829_v31 }
0x13df   :  { %v2831_v33 = vsub.f32 1.5, %v2830_v32 }
0x13e1   :  { %v2832_v34 = vmul.f32 %v3162_v19, %v2831_v33 }
0x13e3   :  { %v2836_v36 = vsel %vm2835_vm2, %v3162_v19, %v2832_v34  ;;  %v2822_v37 = vpop.xlane.xlu1 %2821 }
0x13e4   :  { %v2847_v41 = vmul.f32 %v2836_v36, %v2813_v23  ;;  %v2824_v43 = vmul.f32 %v2822_v37, %v3351_v14 }
0x13e6   :  { %v2850_v45 = vmul.f32 %v3069_v15, %v2847_v41  ;;  %v2826_v38 = vadd.f32 1e-05, %v2824_v43 }
0x13e8   :  { %3163 = vrsqrt.f32 %v2826_v38  ;;  %v2853_v46 = vadd.f32 %v3070_v44, %v2850_v45  ;;  %vm2843_vm4 = vweird.f32 %v2826_v38 }
0x13ea   :  { %2855 = vst.msk [vmem:[#allocation8] sm:$0xff] %vm92_vm0, %v2853_v46 }
0x13ee   :  { %v3164_v48 = vpop.eup %3163 }
0x13ef   :  { %v2838_v51 = vmul.f32 %v3164_v48, %v2826_v38  ;;  %vm2844_vm3 = vweird.f32 %v3164_v48 }
0x13f0   :  { %vm2845_vm5 = vmor %vm2843_vm4, %vm2844_vm3 }
0x13f1   :  { %v2839_v42 = vmul.f32 %v3164_v48, %v2838_v51 }
0x13f3   :  { %v2840_v53 = vmul.f32 0.5, %v2839_v42 }
0x13f5   :  { %v2841_v55 = vsub.f32 1.5, %v2840_v53 }
0x13f7   :  { %v2842_v13 = vmul.f32 %v3164_v48, %v2841_v55 }
0x13f9   :  { %v2846_v47 = vsel %vm2845_vm5, %v3164_v48, %v2842_v13 }
0x13fa   :  { %v2848_v58 = vmul.f32 %v2846_v47, %v2814_v26 }
0x13fc   :  { %v2851_v14 = vmul.f32 %v3069_v15, %v2848_v58 }
0x13fe   :  { %v2854_v28 = vadd.f32 %v3070_v44, %v2851_v14 }
0x1400   :  { %2856 = vst.msk [vmem:[#allocation8 + $0x8] sm:$0xff] %vm92_vm0, %v2854_v28 }
0x1401   :  { %2869 = dma.vmem_to_hbm [thread:$0]  %s2862_s5, 256, %s2864_s6, [#allocation4], %s3272_s9, %s3272_s9, %s3273_s10  }
0x1402   :  { %3269 = dma.done.wait [#allocation4], 256  }
0x1403   :  { %3270 = vsyncadd [#allocation4], 4294967040 }
0x1404   :  { %2874 = vsyncpa [#allocation3], 1 }
0x1405   :  { %2875 = vsyncpa [#allocation6], 1 }
0x1406   :  { %2876 = vsyncpa [#allocation4], 1 }

</bundles_post_ra>
